<compile_context>
chip_gen: v7x
topology: tpu7x:2x2x1
jax: 0.10.0
libtpu: 0.0.40
codegen_flags: <defaults>
</compile_context>

<pallas_src>
import functools

import jax
import jax.numpy as jnp
from jax.experimental import pallas as pl
from jax.experimental.pallas import tpu as pltpu

PAD = 128  # padded width of every hidden feature dimension (sublane axis)


def _round_up(n, m):
    return ((n + m - 1) // m) * m


def _nde_kernel(x_ref, w0_ref, ws_ref, bias_ref, out_ref, *,
                time_row, compute_dtype):
    """Transposed-layout forward: activations are (features, batch_tile)."""
    f32 = jnp.float32
    cd = compute_dtype

    xt = x_ref[...]                                   # (IN_PAD, TB), cd
    t = xt[time_row:time_row + 1, :].astype(f32)      # (1, TB) horizon row

    b = bias_ref[...]                                 # (PAD, 8) f32 slab
    b0, b1, b2 = b[:, 0:1], b[:, 1:2], b[:, 2:3]      # embedding biases
    pwt0 = b[:, 3:4]                                  # squared time column
    pb0, pb1, pb2, pb3 = b[:, 4:5], b[:, 5:6], b[:, 6:7], b[:, 7:8]

    # ---- embedding MLP: Linear + Tanh x3 (MXU, f32 accumulate) ----
    h = jnp.tanh(jnp.dot(w0_ref[...], xt, preferred_element_type=f32) + b0)
    h = jnp.tanh(jnp.dot(ws_ref[0], h.astype(cd),
                         preferred_element_type=f32) + b1)
    h = jnp.tanh(jnp.dot(ws_ref[1], h.astype(cd),
                         preferred_element_type=f32) + b2)

    # ---- outcome MLP (PositiveLinear weights pre-squared in the wrapper) ----
    # concat([embed, time]) folded: embed part via MXU, time part via a
    # (PAD,1)x(1,TB) broadcast multiply on the VPU.
    z = (jnp.dot(ws_ref[2], h.astype(cd), preferred_element_type=f32)
         + pwt0 * t + pb0)
    z = jnp.tanh(z)
    z = jnp.tanh(jnp.dot(ws_ref[3], z.astype(cd),
                         preferred_element_type=f32) + pb1)
    z = jnp.tanh(jnp.dot(ws_ref[4], z.astype(cd),
                         preferred_element_type=f32) + pb2)
    s = jnp.dot(ws_ref[5], z.astype(cd), preferred_element_type=f32) + pb3

    # Only output row 0 is real: sigmoid on (1, TB) only, lane-dense store.
    s0 = s[0:1, :]
    # Matches the reference 1 - sigmoid(s) exactly (parity over stability).
    # TODO(synk): sigmoid(-s0) is the numerically-stable equivalent if a
    # downstream consumer needs log-survival for large s.
    out_ref[0] = 1.0 - jax.nn.sigmoid(s0)             # (1, TB)


def _pad2(a, rows, cols, dtype=jnp.float32):
    out = jnp.zeros((rows, cols), dtype)
    return out.at[: a.shape[0], : a.shape[1]].set(a.astype(dtype))


def nde_forward_pallas(x, horizon, params, *, tile_b=1024, use_bf16=False):
    """x: (B, inputdim) f32; horizon: (B,) f32. Returns (B, 1) = 1 - survival."""
    B, D = x.shape
    (w0, b0, w1, b1, w2, b2,
     plw0, plb0, plw1, plb1, plw2, plb2, plw3, plb3) = params

    emb = w2.shape[1]                       # 32
    # Hidden widths must fit one padded sublane block; concat layout check.
    assert w0.shape[1] <= PAD and w1.shape[1] <= PAD and w2.shape[1] <= PAD
    assert plw0.shape[1] <= PAD and plw1.shape[1] <= PAD and plw2.shape[1] <= PAD
    assert plw0.shape[0] == emb + 1, "outcome input must be [embed | time]"

    wdt = jnp.bfloat16 if use_bf16 else jnp.float32   # MXU operand dtype

    # input slab sublane width: real features + 1 horizon row, padded to 8
    IN_PAD = _round_up(D + 1, 8)

    # ---- batch tiling: batch is the lane axis, so TB must be a multiple of
    # 128; for large B cap TB so num_tiles >= 2 (both v7x TCs get work). ----
    if B >= 256:
        cap = _round_up(-(-B // 2), 128)
    else:
        cap = _round_up(max(B, 1), 128)
    TB = max(128, min(_round_up(tile_b, 128), cap))
    B_pad = _round_up(B, TB)
    num_tiles = B_pad // TB

    # ---- input slab: (features+horizon on sublanes, batch on lanes) ----
    x_t = jnp.zeros((IN_PAD, B_pad), wdt)
    x_t = x_t.at[:D, :B].set(x.T.astype(wdt))
    x_t = x_t.at[D, :B].set(horizon.astype(wdt))

    # ---- weights in PyTorch-native (out, in) orientation (y = W @ x + b),
    # zero-padded; PositiveLinear weights pre-squared here. ----
    w0_p = _pad2(w0.T, PAD, IN_PAD, wdt)              # column D (time) is zero pad
    wstack = jnp.stack([
        _pad2(w1.T, PAD, PAD, wdt),
        _pad2(w2.T, PAD, PAD, wdt),
        _pad2((plw0[:emb, :] ** 2).T, PAD, PAD, wdt),   # embed part of concat
        _pad2((plw1 ** 2).T, PAD, PAD, wdt),
        _pad2((plw2 ** 2).T, PAD, PAD, wdt),
        _pad2((plw3 ** 2).T, PAD, PAD, wdt),            # only row 0 is real
    ])

    # ---- single resident bias/time slab (f32): one (PAD, 8) block ----
    bias = jnp.zeros((PAD, 8), jnp.float32)
    bias = bias.at[:b0.shape[0], 0].set(b0)
    bias = bias.at[:b1.shape[0], 1].set(b1)
    bias = bias.at[:b2.shape[0], 2].set(b2)
    bias = bias.at[:plw0.shape[1], 3].set(plw0[emb, :] ** 2)   # squared time col
    bias = bias.at[:plb0.shape[0], 4].set(plb0)
    bias = bias.at[:plb1.shape[0], 5].set(plb1)
    bias = bias.at[:plb2.shape[0], 6].set(plb2)
    bias = bias.at[0, 7].set(plb3[0])

    # ---- specs: x/out move with the batch tile, weights stay resident ----
    x_spec = pl.BlockSpec((IN_PAD, TB), lambda i: (0, i))
    w0_spec = pl.BlockSpec(w0_p.shape, lambda i: (0, 0))
    ws_spec = pl.BlockSpec(wstack.shape, lambda i: (0, 0, 0))
    b_spec = pl.BlockSpec(bias.shape, lambda i: (0, 0))
    out_spec = pl.BlockSpec((1, 1, TB), lambda i: (i, 0, 0))

    wbytes = (w0_p.size * w0_p.dtype.itemsize
              + wstack.size * wstack.dtype.itemsize
              + bias.size * bias.dtype.itemsize)
    cost = pl.CostEstimate(
        flops=2 * B_pad * PAD * (IN_PAD + 6 * PAD),
        transcendentals=B_pad * (6 * PAD + 1),        # 6x tanh + 1 sigmoid/row
        bytes_accessed=B_pad * IN_PAD * x_t.dtype.itemsize + B_pad * 4 + wbytes,
    )

    kernel = functools.partial(_nde_kernel, time_row=D, compute_dtype=wdt)

    out = pl.pallas_call(
        kernel,
        out_shape=jax.ShapeDtypeStruct((num_tiles, 1, TB), jnp.float32),
        grid=(num_tiles,),
        in_specs=[x_spec, w0_spec, ws_spec, b_spec],
        out_specs=out_spec,
        compiler_params=pltpu.CompilerParams(
            dimension_semantics=("parallel",)),        # v7x: tiles over 2 TCs
        cost_estimate=cost,
    )(x_t, w0_p, wstack, bias)

    # rows B..B_pad-1 are padding garbage; slice them off here.
    return out.reshape(B_pad)[:B].reshape(B, 1)


def _init_params(key, inputdim, layers, layers_surv):
    """Deterministic synthetic init (shapes match the PyTorch module)."""
    ks = list(jax.random.split(key, 16))
    params = []

    # embedding: Linear(prev, hidden) stored as (in, out)
    prev = inputdim
    for i, hidden in enumerate(layers):
        limit = (1.0 / prev) ** 0.5
        w = jax.random.uniform(ks[2 * i], (prev, hidden),
                               minval=-limit, maxval=limit, dtype=jnp.float32)
        b = jax.random.uniform(ks[2 * i + 1], (hidden,),
                               minval=-limit, maxval=limit, dtype=jnp.float32)
        params += [w, b]
        prev = hidden

    # outcome: PositiveLinear log_weights stored as (in, out)
    prev = 1 + layers[-1]
    dims = layers_surv + [1]
    for j, hidden in enumerate(dims):
        limit = (6.0 / (prev + hidden)) ** 0.5
        lw = jax.random.uniform(ks[6 + 2 * j], (prev, hidden),
                                minval=-limit, maxval=limit, dtype=jnp.float32)
        lw = jnp.sqrt(jnp.abs(lw))  # matches log_weight.data.abs_().sqrt_()
        bound = (1.0 / (prev ** 0.5)) ** 0.5
        b = jax.random.uniform(ks[7 + 2 * j], (hidden,),
                               minval=-bound, maxval=bound, dtype=jnp.float32)
        params += [lw, b]
        prev = hidden

    return tuple(params)


def _nde_forward_ref(x, horizon, params):
    """Plain-JAX reference for validation."""
    (w0, b0, w1, b1, w2, b2,
     plw0, plb0, plw1, plb1, plw2, plb2, plw3, plb3) = params
    h = jnp.tanh(x @ w0 + b0)
    h = jnp.tanh(h @ w1 + b1)
    h = jnp.tanh(h @ w2 + b2)
    z = jnp.concatenate([h, horizon[:, None]], axis=1)
    z = jnp.tanh(z @ (plw0 ** 2) + plb0)
    z = jnp.tanh(z @ (plw1 ** 2) + plb1)
    z = jnp.tanh(z @ (plw2 ** 2) + plb2)
    s = z @ (plw3 ** 2) + plb3
    return 1.0 - jax.nn.sigmoid(s)


if __name__ == "__main__":
    INPUTDIM = 16
    LAYERS = [32, 32, 32]
    LAYERS_SURV = [100, 100, 100]

    key = jax.random.PRNGKey(0)
    kx, kh, kp = jax.random.split(key, 3)
    params = _init_params(kp, INPUTDIM, LAYERS, LAYERS_SURV)

    # --- small batch (single tile), strict f32 check ---
    B = 8
    x = jax.random.normal(kx, (B, INPUTDIM), dtype=jnp.float32)
    horizon = jax.random.uniform(kh, (B,), dtype=jnp.float32)

    out = jax.block_until_ready(nde_forward_pallas(x, horizon, params))
    ref = _nde_forward_ref(x, horizon, params)
    assert out.shape == (B, 1), out.shape
    assert jnp.allclose(out, ref, atol=1e-5, rtol=1e-5), (out, ref)

    # --- larger batch exercising the tiled grid (2 tiles on the parallel
    # axis -> both v7x TensorCores), strict f32 ---
    B2 = 512
    x2 = jax.random.normal(kx, (B2, INPUTDIM), dtype=jnp.float32)
    horizon2 = jax.random.uniform(kh, (B2,), dtype=jnp.float32)
    out2 = jax.block_until_ready(nde_forward_pallas(x2, horizon2, params))
    ref2 = _nde_forward_ref(x2, horizon2, params)
    assert out2.shape == (B2, 1), out2.shape
    assert jnp.allclose(out2, ref2, atol=1e-5, rtol=1e-5)

    # --- bf16 MXU operands (f32 accumulation) for v6e/v7x.  bf16 rounding
    # compounds across 7 layers, so gate on sanity (shape / finite / valid
    # survival range) rather than a tight absolute tolerance. ---
    out_bf = jax.block_until_ready(
        nde_forward_pallas(x2, horizon2, params, use_bf16=True))
    assert out_bf.shape == (B2, 1), out_bf.shape
    assert bool(jnp.all(jnp.isfinite(out_bf)))
    assert bool(jnp.all((out_bf >= -1e-3) & (out_bf <= 1.0 + 1e-3)))

    # TODO(synk): gradient=True branch (intensity = d survival / d horizon via
    # autograd) not implemented in-kernel; PyTorch autograd.grad has no direct
    # Pallas equivalent here.
    print("KERNEL_OK")
</pallas_src>

<mosaic_0001>
module attributes {stable_mosaic.version = 11 : i64} {
  func.func @_nde_kernel(%arg0: i32, %arg1: memref<24x128xf32, #tpu.memory_space<vmem>>, %arg2: memref<128x24xf32, #tpu.memory_space<vmem>>, %arg3: memref<6x128x128xf32, #tpu.memory_space<vmem>>, %arg4: memref<128x8xf32, #tpu.memory_space<vmem>>, %arg5: memref<1x1x128xf32, #tpu.memory_space<vmem>>) attributes {dimension_semantics = [#tpu.dimension_semantics<parallel>], iteration_bounds = array<i64: 1>, scalar_prefetch = 0 : i64, scratch_operands = 0 : i64, tpu.core_type = #tpu.core_type<tc>, window_params = [{transform_indices = @transform_0, window_bounds = array<i64: 24, 128>}, {pipeline_mode = #tpu.pipeline_mode<synchronous>, transform_indices = @transform_1, window_bounds = array<i64: 128, 24>}, {pipeline_mode = #tpu.pipeline_mode<synchronous>, transform_indices = @transform_2, window_bounds = array<i64: 6, 128, 128>}, {pipeline_mode = #tpu.pipeline_mode<synchronous>, transform_indices = @transform_3, window_bounds = array<i64: 128, 8>}, {transform_indices = @transform_4, window_bounds = array<i64: 1, 1, 128>}]} {
    %c0 = arith.constant 0 : index
    %c0_0 = arith.constant 0 : index
    %0 = vector.load %arg1[%c0, %c0_0] : memref<24x128xf32, #tpu.memory_space<vmem>>, vector<24x128xf32>
    %1 = vector.extract_strided_slice %0 {offsets = [16, 0], sizes = [1, 128], strides = [1, 1]} : vector<24x128xf32> to vector<1x128xf32>
    %c0_1 = arith.constant 0 : index
    %c0_2 = arith.constant 0 : index
    %2 = vector.load %arg4[%c0_1, %c0_2] : memref<128x8xf32, #tpu.memory_space<vmem>>, vector<128x8xf32>
    %3 = vector.extract_strided_slice %2 {offsets = [0, 0], sizes = [128, 1], strides = [1, 1]} : vector<128x8xf32> to vector<128x1xf32>
    %4 = vector.extract_strided_slice %2 {offsets = [0, 1], sizes = [128, 1], strides = [1, 1]} : vector<128x8xf32> to vector<128x1xf32>
    %5 = vector.extract_strided_slice %2 {offsets = [0, 2], sizes = [128, 1], strides = [1, 1]} : vector<128x8xf32> to vector<128x1xf32>
    %6 = vector.extract_strided_slice %2 {offsets = [0, 3], sizes = [128, 1], strides = [1, 1]} : vector<128x8xf32> to vector<128x1xf32>
    %7 = vector.extract_strided_slice %2 {offsets = [0, 4], sizes = [128, 1], strides = [1, 1]} : vector<128x8xf32> to vector<128x1xf32>
    %8 = vector.extract_strided_slice %2 {offsets = [0, 5], sizes = [128, 1], strides = [1, 1]} : vector<128x8xf32> to vector<128x1xf32>
    %9 = vector.extract_strided_slice %2 {offsets = [0, 6], sizes = [128, 1], strides = [1, 1]} : vector<128x8xf32> to vector<128x1xf32>
    %10 = vector.extract_strided_slice %2 {offsets = [0, 7], sizes = [128, 1], strides = [1, 1]} : vector<128x8xf32> to vector<128x1xf32>
    %c0_3 = arith.constant 0 : index
    %c0_4 = arith.constant 0 : index
    %11 = vector.load %arg2[%c0_3, %c0_4] : memref<128x24xf32, #tpu.memory_space<vmem>>, vector<128x24xf32>
    %cst = arith.constant dense<0.000000e+00> : vector<128x128xf32>
    %12 = tpu.matmul %11, %0, %cst {dimension_numbers = #tpu.dot_dimension_numbers<[1], [0], [0], [1], [0, 0, 1, 1], [], []>} : vector<128x24xf32>, vector<24x128xf32>, vector<128x128xf32> -> vector<128x128xf32>
    %13 = vector.broadcast %3 : vector<128x1xf32> to vector<128x128xf32>
    %14 = arith.addf %12, %13 : vector<128x128xf32>
    %15 = math.tanh %14 : vector<128x128xf32>
    %c0_5 = arith.constant 0 : index
    %c0_6 = arith.constant 0 : index
    %c0_7 = arith.constant 0 : index
    %16 = vector.load %arg3[%c0_5, %c0_6, %c0_7] : memref<6x128x128xf32, #tpu.memory_space<vmem>>, vector<1x128x128xf32>
    %17 = vector.shape_cast %16 : vector<1x128x128xf32> to vector<128x128xf32>
    %cst_8 = arith.constant dense<0.000000e+00> : vector<128x128xf32>
    %18 = tpu.matmul %17, %15, %cst_8 {dimension_numbers = #tpu.dot_dimension_numbers<[1], [0], [0], [1], [0, 0, 1, 1], [], []>} : vector<128x128xf32>, vector<128x128xf32>, vector<128x128xf32> -> vector<128x128xf32>
    %19 = vector.broadcast %4 : vector<128x1xf32> to vector<128x128xf32>
    %20 = arith.addf %18, %19 : vector<128x128xf32>
    %21 = math.tanh %20 : vector<128x128xf32>
    %c1 = arith.constant 1 : index
    %c0_9 = arith.constant 0 : index
    %c0_10 = arith.constant 0 : index
    %22 = vector.load %arg3[%c1, %c0_9, %c0_10] : memref<6x128x128xf32, #tpu.memory_space<vmem>>, vector<1x128x128xf32>
    %23 = vector.shape_cast %22 : vector<1x128x128xf32> to vector<128x128xf32>
    %cst_11 = arith.constant dense<0.000000e+00> : vector<128x128xf32>
    %24 = tpu.matmul %23, %21, %cst_11 {dimension_numbers = #tpu.dot_dimension_numbers<[1], [0], [0], [1], [0, 0, 1, 1], [], []>} : vector<128x128xf32>, vector<128x128xf32>, vector<128x128xf32> -> vector<128x128xf32>
    %25 = vector.broadcast %5 : vector<128x1xf32> to vector<128x128xf32>
    %26 = arith.addf %24, %25 : vector<128x128xf32>
    %27 = math.tanh %26 : vector<128x128xf32>
    %c2 = arith.constant 2 : index
    %c0_12 = arith.constant 0 : index
    %c0_13 = arith.constant 0 : index
    %28 = vector.load %arg3[%c2, %c0_12, %c0_13] : memref<6x128x128xf32, #tpu.memory_space<vmem>>, vector<1x128x128xf32>
    %29 = vector.shape_cast %28 : vector<1x128x128xf32> to vector<128x128xf32>
    %cst_14 = arith.constant dense<0.000000e+00> : vector<128x128xf32>
    %30 = tpu.matmul %29, %27, %cst_14 {dimension_numbers = #tpu.dot_dimension_numbers<[1], [0], [0], [1], [0, 0, 1, 1], [], []>} : vector<128x128xf32>, vector<128x128xf32>, vector<128x128xf32> -> vector<128x128xf32>
    %31 = vector.broadcast %6 : vector<128x1xf32> to vector<128x128xf32>
    %32 = vector.broadcast %1 : vector<1x128xf32> to vector<128x128xf32>
    %33 = arith.mulf %31, %32 : vector<128x128xf32>
    %34 = arith.addf %30, %33 : vector<128x128xf32>
    %35 = vector.broadcast %7 : vector<128x1xf32> to vector<128x128xf32>
    %36 = arith.addf %34, %35 : vector<128x128xf32>
    %37 = math.tanh %36 : vector<128x128xf32>
    %c3 = arith.constant 3 : index
    %c0_15 = arith.constant 0 : index
    %c0_16 = arith.constant 0 : index
    %38 = vector.load %arg3[%c3, %c0_15, %c0_16] : memref<6x128x128xf32, #tpu.memory_space<vmem>>, vector<1x128x128xf32>
    %39 = vector.shape_cast %38 : vector<1x128x128xf32> to vector<128x128xf32>
    %cst_17 = arith.constant dense<0.000000e+00> : vector<128x128xf32>
    %40 = tpu.matmul %39, %37, %cst_17 {dimension_numbers = #tpu.dot_dimension_numbers<[1], [0], [0], [1], [0, 0, 1, 1], [], []>} : vector<128x128xf32>, vector<128x128xf32>, vector<128x128xf32> -> vector<128x128xf32>
    %41 = vector.broadcast %8 : vector<128x1xf32> to vector<128x128xf32>
    %42 = arith.addf %40, %41 : vector<128x128xf32>
    %43 = math.tanh %42 : vector<128x128xf32>
    %c4 = arith.constant 4 : index
    %c0_18 = arith.constant 0 : index
    %c0_19 = arith.constant 0 : index
    %44 = vector.load %arg3[%c4, %c0_18, %c0_19] : memref<6x128x128xf32, #tpu.memory_space<vmem>>, vector<1x128x128xf32>
    %45 = vector.shape_cast %44 : vector<1x128x128xf32> to vector<128x128xf32>
    %cst_20 = arith.constant dense<0.000000e+00> : vector<128x128xf32>
    %46 = tpu.matmul %45, %43, %cst_20 {dimension_numbers = #tpu.dot_dimension_numbers<[1], [0], [0], [1], [0, 0, 1, 1], [], []>} : vector<128x128xf32>, vector<128x128xf32>, vector<128x128xf32> -> vector<128x128xf32>
    %47 = vector.broadcast %9 : vector<128x1xf32> to vector<128x128xf32>
    %48 = arith.addf %46, %47 : vector<128x128xf32>
    %49 = math.tanh %48 : vector<128x128xf32>
    %c5 = arith.constant 5 : index
    %c0_21 = arith.constant 0 : index
    %c0_22 = arith.constant 0 : index
    %50 = vector.load %arg3[%c5, %c0_21, %c0_22] : memref<6x128x128xf32, #tpu.memory_space<vmem>>, vector<1x128x128xf32>
    %51 = vector.shape_cast %50 : vector<1x128x128xf32> to vector<128x128xf32>
    %cst_23 = arith.constant dense<0.000000e+00> : vector<128x128xf32>
    %52 = tpu.matmul %51, %49, %cst_23 {dimension_numbers = #tpu.dot_dimension_numbers<[1], [0], [0], [1], [0, 0, 1, 1], [], []>} : vector<128x128xf32>, vector<128x128xf32>, vector<128x128xf32> -> vector<128x128xf32>
    %53 = vector.broadcast %10 : vector<128x1xf32> to vector<128x128xf32>
    %54 = arith.addf %52, %53 : vector<128x128xf32>
    %55 = vector.extract_strided_slice %54 {offsets = [0, 0], sizes = [1, 128], strides = [1, 1]} : vector<128x128xf32> to vector<1x128xf32>
    %56 = arith.negf %55 : vector<1x128xf32>
    %57 = math.exp %56 : vector<1x128xf32>
    %cst_24 = arith.constant 1.000000e+00 : f32
    %58 = vector.broadcast %cst_24 : f32 to vector<1x128xf32>
    %59 = arith.addf %58, %57 : vector<1x128xf32>
    %60 = arith.divf %58, %59 : vector<1x128xf32>
    %cst_25 = arith.constant 1.000000e+00 : f32
    %61 = vector.broadcast %cst_25 : f32 to vector<1x128xf32>
    %62 = arith.subf %61, %60 : vector<1x128xf32>
    %c0_26 = arith.constant 0 : index
    %c0_27 = arith.constant 0 : index
    %c0_28 = arith.constant 0 : index
    %63 = vector.load %arg5[%c0_26, %c0_27, %c0_28] : memref<1x1x128xf32, #tpu.memory_space<vmem>>, vector<1x1x128xf32>
    %64 = vector.shape_cast %63 : vector<1x1x128xf32> to vector<1x128xf32>
    %65 = vector.shape_cast %62 : vector<1x128xf32> to vector<1x1x128xf32>
    tpu.vector_store %arg5[%c0_26, %c0_27, %c0_28], %65 {strides = array<i32>} : memref<1x1x128xf32, #tpu.memory_space<vmem>>, vector<1x1x128xf32>,
    return
  }
  func.func @transform_0(%arg0: i32) -> (i32, i32) {
    %c0_i32 = arith.constant 0 : i32
    %c0_i32_0 = arith.constant 0 : i32
    return %c0_i32, %arg0 : i32, i32
  }
  func.func @transform_1(%arg0: i32) -> (i32, i32) {
    %c0_i32 = arith.constant 0 : i32
    %c0_i32_0 = arith.constant 0 : i32
    %c0_i32_1 = arith.constant 0 : i32
    return %c0_i32, %c0_i32_0 : i32, i32
  }
  func.func @transform_2(%arg0: i32) -> (i32, i32, i32) {
    %c0_i32 = arith.constant 0 : i32
    %c0_i32_0 = arith.constant 0 : i32
    %c0_i32_1 = arith.constant 0 : i32
    %c0_i32_2 = arith.constant 0 : i32
    return %c0_i32, %c0_i32_0, %c0_i32_1 : i32, i32, i32
  }
  func.func @transform_3(%arg0: i32) -> (i32, i32) {
    %c0_i32 = arith.constant 0 : i32
    %c0_i32_0 = arith.constant 0 : i32
    %c0_i32_1 = arith.constant 0 : i32
    return %c0_i32, %c0_i32_0 : i32, i32
  }
  func.func @transform_4(%arg0: i32) -> (i32, i32, i32) {
    %c0_i32 = arith.constant 0 : i32
    %c0_i32_0 = arith.constant 0 : i32
    %c0_i32_1 = arith.constant 0 : i32
    return %arg0, %c0_i32, %c0_i32_0 : i32, i32, i32
  }
}

</mosaic_0001>

<bundles_post_ra>
// kernel: tpu_custom_call.1
= control target key start
LH: loop header
LB: loop body
LE: loop exit
PB: predicated region body
PF: predicated region fallthrough
CT: control target
= control target key end

     0   :  { %9 = vsyncpa [#allocation3], 0  ;;  %s3467_s0 = inlined_call_operand.vmem [shape: f32[24,128], index: 0, kind: input, shape index: {}]   ;;  %s3468_s1 = inlined_call_operand.vmem [shape: f32[128,24], index: 1, kind: input, shape index: {}]   ;;  %s3469_s2 = inlined_call_operand.hbm [shape: f32[6,128,128], index: 2, kind: input, shape index: {}]   ;;  %s3470_s3 = inlined_call_operand.vmem [shape: f32[128,8], index: 3, kind: input, shape index: {}]   ;;  %s3471_s4 = inlined_call_operand.hbm [shape: f32[1,1,128], index: 4, kind: output, shape index: {}]  }
   0x1   :  { %10 = vsyncpa [#allocation4], 0  ;;  %s2975_s15 = smov [#allocation2]   ;;  %s2927_s19 = scalar_lea.hbm %s3469_s2, 12288 }
   0x2   :  { %s20_s16 = sshll.u32 %s2975_s15, 4  ;;  %p2928_p0 = scmp.ne.s32.totalorder %s3469_s2, %s2927_s19  ;;  %s21_s16 = int_to_ptr.vmem [resolvable:$true] %s20_s16 }
   0x3   :  { %p2931_p1 = scmp.lt.u32.totalorder %s2927_s19, %s3469_s2 }
   0x5   :  { %p2933_p2 = pnand %p2931_p1, %p2928_p0 }
   0x7   :  { %2936 = shalt.err (!%p2933_p2)
}
   0x8   :  { %s2937_s24 = scalar_lea.vmem %s21_s16, 12288  ;;  %p2942_p4 = scmp.lt.s32.totalorder %s21_s16, %s21_s16 }
   0x9   :  { %p2938_p3 = scmp.ne.s32.totalorder %s21_s16, %s2937_s24  ;;  %p2943_p5 = scmp.lt.s32.totalorder %s2937_s24, %s2937_s24 }
   0xb   :  { %p2944_p6 = por %p2943_p5, %p2942_p4 }
   0xd   :  { %p2945_p7 = pnand %p2944_p6, %p2938_p3 }
   0xf   :  { %2948 = shalt.err (!%p2945_p7)
}
  0x10   :  { %s2976_s25 = smov 128   ;;  %s2977_s26 = smov 8  }
  0x11   :  { %26 = dma.hbm_to_vmem [thread:$0]  %s3469_s2, 12288, %s21_s16, [#allocation3], %s2976_s25, %s2976_s25, %s2977_s26  }
  0x12   :  { %2971 = dma.done.wait [#allocation3], 12288  }
  0x13   :  { %2972 = vsyncadd [#allocation3], 4294955008  ;;  %v2978_v0 = vmov 0   ;;  %vm147_vm0 = vcmask 195584   ;;  %v32_v1 = vld [vmem:[%s3467_s0] sm:$0xff]  ;;  %v33_v2 = vld [vmem:[%s3467_s0 + $0x8] sm:$0xff] }
  0x14   :  { %2687 = vset.pattern.permute.xlu0 %v2978_v0  ;;  %2688 = vset.pattern.permute.xlu1 %v2978_v0  ;;  %v2479_v3 = vpack.c.bf16 %v33_v2, %v32_v1  ;;  %v51_v4 = vld [vmem:[%s3468_s1] sm:$0xff]  ;;  %v34_v5 = vld [vmem:[%s3467_s0 + $0x10] sm:$0xff]  ;;  %v52_v6 = vld [vmem:[%s3468_s1 + $0x8] sm:$0xff]  ;;  %v2979_v38 = vmov 1  }
  0x15   :  { %2119 = vmatprep.mubr.msk.f32.mxu0 %vm147_vm0, %v51_v4  ;;  %v3043_v7 = vld [vmem:[%s3470_s3] sm:$0xff]  ;;  %v3048_v8 = vld [vmem:[%s3470_s3 + $0x10] sm:$0xff]  ;;  %v3058_v10 = vld [vmem:[%s3470_s3 + $0x8] sm:$0xff] }
  0x16   :  { %2480 = vmatprep.subr.bf16.mxu0 %v2479_v3  ;;  %v53_v9 = vld [vmem:[%s3468_s1 + $0x10] sm:$0xff]  ;;  %69 = vperm.xlu0 %2687, %v3043_v7   ;;  %v3063_v11 = vld [vmem:[%s3470_s3 + $0x18] sm:$0xff]  ;;  %v55_v13 = vld [vmem:[%s3468_s1 + $0x20] sm:$0xff] }
  0x17   :  { %2482 = vmatpush3.bf16.msra.mxu0 %v2479_v3  ;;  %79 = vperm.xlu1 %2688, %v3048_v8   ;;  %v54_v12 = vld [vmem:[%s3468_s1 + $0x18] sm:$0xff]  ;;  %v3078_v14 = vld [vmem:[%s3470_s3 + $0x20] sm:$0xff]  ;;  %v3083_v15 = vld [vmem:[%s3470_s3 + $0x28] sm:$0xff] }
  0x18   :  { %2117 = vmatprep.subr.mxu0 %v34_v5  ;;  %v56_v16 = vld [vmem:[%s3468_s1 + $0x28] sm:$0xff]  ;;  %v57_v17 = vld [vmem:[%s3468_s1 + $0x30] sm:$0xff]  ;;  %v3103_v19 = vld [vmem:[%s3470_s3 + $0x38] sm:$0xff] }
  0x19   :  { %v3098_v18 = vld [vmem:[%s3470_s3 + $0x30] sm:$0xff]  ;;  %v58_v20 = vld [vmem:[%s3468_s1 + $0x38] sm:$0xff]  ;;  %v59_v21 = vld [vmem:[%s3468_s1 + $0x40] sm:$0xff] }
  0x1a   :  { %74 = vperm.xlu0 %2687, %v3058_v10   ;;  %v3118_v22 = vld [vmem:[%s3470_s3 + $0x40] sm:$0xff]  ;;  %v3123_v23 = vld [vmem:[%s3470_s3 + $0x48] sm:$0xff]  ;;  %v61_v25 = vld [vmem:[%s3468_s1 + $0x50] sm:$0xff] }
  0x1b   :  { %2118 = vmatpush3.msra.mxu0 %v34_v5  ;;  %84 = vperm.xlu1 %2688, %v3063_v11   ;;  %v60_v24 = vld [vmem:[%s3468_s1 + $0x48] sm:$0xff]  ;;  %v3138_v26 = vld [vmem:[%s3470_s3 + $0x50] sm:$0xff]  ;;  %v3143_v27 = vld [vmem:[%s3470_s3 + $0x58] sm:$0xff] }
  0x1c   :  { %2120 = vmatmul.mubr.msk.f32.vlgmr.msra.gmra.mrb[0].mxu0 %vm147_vm0, %v52_v6  ;;  %v62_v28 = vld [vmem:[%s3468_s1 + $0x58] sm:$0xff]  ;;  %v63_v29 = vld [vmem:[%s3468_s1 + $0x60] sm:$0xff]  ;;  %v3163_v31 = vld [vmem:[%s3470_s3 + $0x68] sm:$0xff] }
  0x1d   :  { %2122 = vmatprep.mubr.msk.f32.mxu0 %vm147_vm0, %v53_v9  ;;  %v3158_v30 = vld [vmem:[%s3470_s3 + $0x60] sm:$0xff]  ;;  %v64_v32 = vld [vmem:[%s3468_s1 + $0x68] sm:$0xff]  ;;  %v65_v33 = vld [vmem:[%s3468_s1 + $0x70] sm:$0xff] }
  0x1e   :  { %89 = vperm.xlu0 %2687, %v3078_v14   ;;  %v3178_v34 = vld [vmem:[%s3470_s3 + $0x70] sm:$0xff]  ;;  %v3183_v35 = vld [vmem:[%s3470_s3 + $0x78] sm:$0xff]  ;;  %v357_v37 = vld [vmem:[#allocation2] sm:$0xff] }
  0x1f   :  { %94 = vperm.xlu1 %2688, %v3083_v15   ;;  %v66_v36 = vld [vmem:[%s3468_s1 + $0x78] sm:$0xff]  ;;  %2175 = vmatprep.mubr.f32.mxu1 %v357_v37 }
  0x20   :  { %2123 = vmatmul.mubr.msk.f32.gmra.mrb[2].mxu0 %vm147_vm0, %v54_v12 }
  0x21   :  { %2125 = vmatprep.mubr.msk.f32.mxu0 %vm147_vm0, %v55_v13 }
  0x22   :  { %99 = vperm.xlu0 %2687, %v3098_v18  }
  0x23   :  { %104 = vperm.xlu1 %2688, %v3103_v19  }
  0x24   :  { %2126 = vmatmul.mubr.msk.f32.gmra.mrb[4].mxu0 %vm147_vm0, %v56_v16 }
  0x25   :  { %2128 = vmatprep.mubr.msk.f32.mxu0 %vm147_vm0, %v57_v17 }
  0x26   :  { %109 = vperm.xlu0 %2687, %v3118_v22  }
  0x27   :  { %114 = vperm.xlu1 %2688, %v3123_v23  }
  0x28   :  { %2129 = vmatmul.mubr.msk.f32.gmra.mrb[6].mxu0 %vm147_vm0, %v58_v20 }
  0x29   :  { %2131 = vmatprep.mubr.msk.f32.mxu0 %vm147_vm0, %v59_v21 }
  0x2a   :  { %119 = vperm.xlu0 %2687, %v3138_v26  }
  0x2b   :  { %124 = vperm.xlu1 %2688, %v3143_v27  }
  0x2c   :  { %2132 = vmatmul.mubr.msk.f32.gmra.mrb[8].mxu0 %vm147_vm0, %v60_v24 }
  0x2d   :  { %2134 = vmatprep.mubr.msk.f32.mxu0 %vm147_vm0, %v61_v25 }
  0x2e   :  { %129 = vperm.xlu0 %2687, %v3158_v30  }
  0x2f   :  { %134 = vperm.xlu1 %2688, %v3163_v31  }
  0x30   :  { %2135 = vmatmul.mubr.msk.f32.gmra.mrb[10].mxu0 %vm147_vm0, %v62_v28 }
  0x31   :  { %2137 = vmatprep.mubr.msk.f32.mxu0 %vm147_vm0, %v63_v29 }
  0x32   :  { %139 = vperm.xlu0 %2687, %v3178_v34  }
  0x33   :  { %144 = vperm.xlu1 %2688, %v3183_v35  }
  0x34   :  { %2138 = vmatmul.mubr.msk.f32.gmra.mrb[12].mxu0 %vm147_vm0, %v64_v32 }
  0x35   :  { %2140 = vmatprep.mubr.msk.f32.mxu0 %vm147_vm0, %v65_v33 }
  0x36   :  { %2689 = vset.pattern.permute.xlu0 %v2979_v38 }
  0x37   :  { %2690 = vset.pattern.permute.xlu1 %v2979_v38  ;;  %374 = vperm.xlu0 %2689, %v3043_v7  }
  0x38   :  { %2141 = vmatmul.mubr.msk.f32.gmra.mrb[14].mxu0 %vm147_vm0, %v66_v36  ;;  %378 = vperm.xlu1 %2690, %v3058_v10  }
  0x3b   :  { %386 = vperm.xlu0 %2689, %v3063_v11  }
  0x3c   :  { %382 = vperm.xlu1 %2690, %v3048_v8  }
  0x3f   :  { %394 = vperm.xlu0 %2689, %v3083_v15  }
  0x40   :  { %390 = vperm.xlu1 %2690, %v3078_v14  }
  0x43   :  { %402 = vperm.xlu0 %2689, %v3103_v19  }
  0x44   :  { %398 = vperm.xlu1 %2690, %v3098_v18  }
  0x47   :  { %410 = vperm.xlu0 %2689, %v3123_v23  }
  0x48   :  { %406 = vperm.xlu1 %2690, %v3118_v22  }
  0x4b   :  { %418 = vperm.xlu0 %2689, %v3143_v27  }
  0x4c   :  { %414 = vperm.xlu1 %2690, %v3138_v26  }
  0x4f   :  { %426 = vperm.xlu0 %2689, %v3163_v31  }
  0x50   :  { %422 = vperm.xlu1 %2690, %v3158_v30  }
  0x53   :  { %434 = vperm.xlu0 %2689, %v3183_v35  }
  0x54   :  { %430 = vperm.xlu1 %2690, %v3178_v34  }
  0x95   :  { %v70_v40 = vpop.permute.xlu0 %69 }
  0x96   :  { %v80_v39 = vpop.permute.xlu1 %79 }
  0x99   :  { %v75_v42 = vpop.permute.xlu0 %74 }
  0x9a   :  { %v85_v41 = vpop.permute.xlu1 %84 }
  0x9d   :  { %v90_v44 = vpop.permute.xlu0 %89 }
  0x9e   :  { %v95_v43 = vpop.permute.xlu1 %94 }
  0xa1   :  { %v100_v51 = vpop.permute.xlu0 %99 }
  0xa2   :  { %v105_v49 = vpop.permute.xlu1 %104 }
  0xa5   :  { %v110_v60 = vpop.permute.xlu0 %109 }
  0xa6   :  { %v115_v58 = vpop.permute.xlu1 %114 }
  0xa9   :  { %v120_v9 = vpop.permute.xlu0 %119 }
  0xaa   :  { %v125_v4 = vpop.permute.xlu1 %124 }
  0xad   :  { %v130_v36 = vpop.permute.xlu0 %129 }
  0xae   :  { %v135_v32 = vpop.permute.xlu1 %134 }
  0xef   :  { %v2121_v45 = vpop.f32.mrb[0].mxu0 }
  0xf0   :  { %v268_v46 = vadd.f32 %v2121_v45, %v75_v42  ;;  %v262_v47 = vpop.f32.mrb[1].mxu0  ;;  %v145_v45 = vpop.permute.xlu1 %144 }
  0xf1   :  { %v263_v48 = vadd.f32 %v262_v47, %v70_v40 }
  0xf2   :  { %2714 = vtanh.f32 %v268_v46 }
  0xf3   :  { %2716 = vtanh.f32 %v263_v48  ;;  %v2124_v50 = vpop.f32.mrb[2].mxu0  ;;  %v140_v48 = vpop.permute.xlu0 %139 }
  0xf4   :  { %v278_v52 = vadd.f32 %v2124_v50, %v85_v41  ;;  %v272_v53 = vpop.f32.mrb[3].mxu0 }
  0xf5   :  { %v273_v54 = vadd.f32 %v272_v53, %v80_v39 }
  0xf6   :  { %2718 = vtanh.f32 %v278_v52 }
  0xf7   :  { %2720 = vtanh.f32 %v273_v54  ;;  %v2127_v55 = vpop.f32.mrb[4].mxu0 }
  0xf8   :  { %v288_v56 = vadd.f32 %v2127_v55, %v95_v43  ;;  %v282_v57 = vpop.f32.mrb[5].mxu0 }
  0xf9   :  { %v283_v59 = vadd.f32 %v282_v57, %v90_v44 }
  0xfa   :  { %2722 = vtanh.f32 %v288_v56 }
  0xfb   :  { %2724 = vtanh.f32 %v283_v59  ;;  %v2130_v61 = vpop.f32.mrb[6].mxu0 }
  0xfc   :  { %v2715_v62 = vpop.eup %2714  ;;  %v298_v63 = vadd.f32 %v2130_v61, %v105_v49  ;;  %v292_v0 = vpop.f32.mrb[7].mxu0 }
  0xfd   :  { %v2717_v1 = vpop.eup %2716  ;;  %v293_v2 = vadd.f32 %v292_v0, %v100_v51  ;;  %v359_v0 = vld [vmem:[#allocation2 + $0x10] sm:$0xff] }
  0xfe   :  { %2726 = vtanh.f32 %v298_v63  ;;  %v2483_v3 = vpack.c.bf16 %v2715_v62, %v2717_v1  ;;  %v358_v63 = vld [vmem:[#allocation2 + $0x8] sm:$0xff]  ;;  %v360_v1 = vld [vmem:[#allocation2 + $0x18] sm:$0xff] }
  0xff   :  { %2728 = vtanh.f32 %v293_v2  ;;  %v2133_v5 = vpop.f32.mrb[8].mxu0  ;;  %v361_v2 = vld [vmem:[#allocation2 + $0x20] sm:$0xff] }
 0x100   :  { %v2719_v6 = vpop.eup %2718  ;;  %v308_v12 = vadd.f32 %v2133_v5, %v115_v58  ;;  %v302_v13 = vpop.f32.mrb[9].mxu0  ;;  %2484 = vmatprep.subr.bf16.mxu1 %v2483_v3  ;;  %v364_v5 = vld [vmem:[#allocation2 + $0x38] sm:$0xff] }
 0x101   :  { %v2721_v16 = vpop.eup %2720  ;;  %v303_v17 = vadd.f32 %v302_v13, %v110_v60  ;;  %2486 = vmatpush3.bf16.msra.mxu1 %v2483_v3  ;;  %v362_v3 = vld [vmem:[#allocation2 + $0x28] sm:$0xff]  ;;  %v368_v13 = vld [vmem:[#allocation2 + $0x58] sm:$0xff] }
 0x102   :  { %2730 = vtanh.f32 %v308_v12  ;;  %v2487_v20 = vpack.c.bf16 %v2719_v6, %v2721_v16  ;;  %v365_v6 = vld [vmem:[#allocation2 + $0x40] sm:$0xff]  ;;  %v367_v12 = vld [vmem:[#allocation2 + $0x50] sm:$0xff] }
 0x103   :  { %2732 = vtanh.f32 %v303_v17  ;;  %v2136_v21 = vpop.f32.mrb[10].mxu0  ;;  %v369_v16 = vld [vmem:[#allocation2 + $0x60] sm:$0xff]  ;;  %v370_v17 = vld [vmem:[#allocation2 + $0x68] sm:$0xff] }
 0x104   :  { %v2723_v24 = vpop.eup %2722  ;;  %v318_v25 = vadd.f32 %v2136_v21, %v125_v4  ;;  %v312_v28 = vpop.f32.mrb[11].mxu0  ;;  %2488 = vmatprep.subr.bf16.mxu1 %v2487_v20  ;;  %v363_v4 = vld [vmem:[#allocation2 + $0x30] sm:$0xff]  ;;  %v372_v21 = vld [vmem:[#allocation2 + $0x78] sm:$0xff] }
 0x105   :  { %v2725_v29 = vpop.eup %2724  ;;  %v313_v33 = vadd.f32 %v312_v28, %v120_v9  ;;  %2490 = vmatpush3.bf16.msra.mxu1 %v2487_v20  ;;  %v366_v9 = vld [vmem:[#allocation2 + $0x48] sm:$0xff]  ;;  %v371_v20 = vld [vmem:[#allocation2 + $0x70] sm:$0xff]  ;;  %v375_v28 = vpop.permute.xlu0 %374 }
 0x106   :  { %2734 = vtanh.f32 %v318_v25  ;;  %v2491_v37 = vpack.c.bf16 %v2723_v24, %v2725_v29  ;;  %v599_v24 = vld [vmem:[#allocation2 + $0x80] sm:$0xff]  ;;  %v2980_v25 = vmov 2   ;;  %v379_v29 = vpop.permute.xlu1 %378 }
 0x107   :  { %2736 = vtanh.f32 %v313_v33  ;;  %v2139_v38 = vpop.f32.mrb[12].mxu0  ;;  %2231 = vmatprep.mubr.f32.mxu0 %v599_v24  ;;  %2691 = vset.pattern.permute.xlu1 %v2980_v25 }
 0x108   :  { %v2727_v39 = vpop.eup %2726  ;;  %v328_v40 = vadd.f32 %v2139_v38, %v135_v32  ;;  %v322_v41 = vpop.f32.mrb[13].mxu0  ;;  %2492 = vmatprep.subr.bf16.mxu1 %v2491_v37  ;;  %2692 = vset.pattern.permute.xlu0 %v2980_v25 }
 0x109   :  { %v2729_v42 = vpop.eup %2728  ;;  %v323_v43 = vadd.f32 %v322_v41, %v130_v36  ;;  %2494 = vmatpush3.bf16.msra.mxu1 %v2491_v37  ;;  %616 = vperm.xlu1 %2691, %v3043_v7   ;;  %v387_v32 = vpop.permute.xlu0 %386 }
 0x10a   :  { %2738 = vtanh.f32 %v328_v40  ;;  %v2495_v44 = vpack.c.bf16 %v2727_v39, %v2729_v42  ;;  %620 = vperm.xlu0 %2692, %v3058_v10   ;;  %v383_v33 = vpop.permute.xlu1 %382 }
 0x10b   :  { %2740 = vtanh.f32 %v323_v43  ;;  %v2142_v46 = vpop.f32.mrb[14].mxu0 }
 0x10c   :  { %v2731_v47 = vpop.eup %2730  ;;  %v338_v49 = vadd.f32 %v2142_v46, %v145_v45  ;;  %v332_v50 = vpop.f32.mrb[15].mxu0  ;;  %2496 = vmatprep.subr.bf16.mxu1 %v2495_v44 }
 0x10d   :  { %v2733_v51 = vpop.eup %2732  ;;  %v333_v52 = vadd.f32 %v332_v50, %v140_v48  ;;  %2498 = vmatpush3.bf16.msra.mxu1 %v2495_v44  ;;  %624 = vperm.xlu1 %2691, %v3048_v8   ;;  %v395_v36 = vpop.permute.xlu0 %394 }
 0x10e   :  { %2742 = vtanh.f32 %v338_v49  ;;  %v2499_v53 = vpack.c.bf16 %v2731_v47, %v2733_v51  ;;  %632 = vperm.xlu0 %2692, %v3078_v14   ;;  %v391_v37 = vpop.permute.xlu1 %390 }
 0x10f   :  { %2744 = vtanh.f32 %v333_v52 }
 0x110   :  { %v2735_v54 = vpop.eup %2734  ;;  %2500 = vmatprep.subr.bf16.mxu1 %v2499_v53 }
 0x111   :  { %v2737_v55 = vpop.eup %2736  ;;  %2502 = vmatpush3.bf16.msra.mxu1 %v2499_v53  ;;  %628 = vperm.xlu1 %2691, %v3063_v11   ;;  %v403_v42 = vpop.permute.xlu0 %402 }
 0x112   :  { %v2503_v56 = vpack.c.bf16 %v2735_v54, %v2737_v55  ;;  %640 = vperm.xlu0 %2692, %v3098_v18   ;;  %v399_v44 = vpop.permute.xlu1 %398 }
 0x114   :  { %v2739_v57 = vpop.eup %2738  ;;  %2504 = vmatprep.subr.bf16.mxu1 %v2503_v56 }
 0x115   :  { %v2741_v58 = vpop.eup %2740  ;;  %2506 = vmatpush3.bf16.msra.mxu1 %v2503_v56  ;;  %636 = vperm.xlu1 %2691, %v3083_v15   ;;  %v411_v51 = vpop.permute.xlu0 %410 }
 0x116   :  { %v2507_v59 = vpack.c.bf16 %v2739_v57, %v2741_v58  ;;  %648 = vperm.xlu0 %2692, %v3118_v22   ;;  %v407_v53 = vpop.permute.xlu1 %406 }
 0x118   :  { %v2743_v60 = vpop.eup %2742  ;;  %2508 = vmatprep.subr.bf16.mxu1 %v2507_v59 }
 0x119   :  { %v2745_v61 = vpop.eup %2744  ;;  %2510 = vmatpush3.bf16.msra.mxu1 %v2507_v59  ;;  %644 = vperm.xlu1 %2691, %v3103_v19  }
 0x11a   :  { %v2511_v62 = vpack.c.bf16 %v2743_v60, %v2745_v61  ;;  %656 = vperm.xlu0 %2692, %v3138_v26   ;;  %v419_v61 = vpop.permute.xlu0 %418 }
 0x11c   :  { %2512 = vmatprep.subr.bf16.mxu1 %v2511_v62 }
 0x11d   :  { %2514 = vmatpush3.bf16.msra.mxu1 %v2511_v62  ;;  %652 = vperm.xlu1 %2691, %v3123_v23  }
 0x11e   :  { %664 = vperm.xlu0 %2692, %v3158_v30  }
 0x120   :  { %2176 = vmatmul.mubr.f32.vlgmr.msra.gmra.mrb[0].mxu1 %v358_v63 }
 0x121   :  { %2178 = vmatprep.mubr.f32.mxu1 %v359_v0  ;;  %660 = vperm.xlu1 %2691, %v3143_v27   ;;  %v415_v0 = vpop.permute.xlu1 %414 }
 0x122   :  { %672 = vperm.xlu0 %2692, %v3178_v34  }
 0x124   :  { %2179 = vmatmul.mubr.f32.gmra.mrb[2].mxu1 %v360_v1 }
 0x125   :  { %2181 = vmatprep.mubr.f32.mxu1 %v361_v2  ;;  %668 = vperm.xlu1 %2691, %v3163_v31  }
 0x128   :  { %2182 = vmatmul.mubr.f32.gmra.mrb[4].mxu1 %v362_v3 }
 0x129   :  { %2184 = vmatprep.mubr.f32.mxu1 %v363_v4  ;;  %676 = vperm.xlu1 %2691, %v3183_v35  }
 0x12c   :  { %2185 = vmatmul.mubr.f32.gmra.mrb[6].mxu1 %v364_v5 }
 0x12d   :  { %2187 = vmatprep.mubr.f32.mxu1 %v365_v6 }
 0x130   :  { %2188 = vmatmul.mubr.f32.gmra.mrb[8].mxu1 %v366_v9 }
 0x131   :  { %2190 = vmatprep.mubr.f32.mxu1 %v367_v12 }
 0x134   :  { %2191 = vmatmul.mubr.f32.gmra.mrb[10].mxu1 %v368_v13 }
 0x135   :  { %2193 = vmatprep.mubr.f32.mxu1 %v369_v16 }
 0x138   :  { %2194 = vmatmul.mubr.f32.gmra.mrb[12].mxu1 %v370_v17  ;;  %v427_v17 = vpop.permute.xlu0 %426 }
 0x139   :  { %2196 = vmatprep.mubr.f32.mxu1 %v371_v20 }
 0x13c   :  { %2197 = vmatmul.mubr.f32.gmra.mrb[14].mxu1 %v372_v21  ;;  %v423_v21 = vpop.permute.xlu1 %422 }
 0x1f3   :  { %v2177_v38 = vpop.f32.mrb[0].mxu1 }
 0x1f4   :  { %v509_v39 = vadd.f32 %v2177_v38, %v379_v29  ;;  %v503_v40 = vpop.f32.mrb[1].mxu1  ;;  %v435_v38 = vpop.permute.xlu0 %434 }
 0x1f5   :  { %v504_v41 = vadd.f32 %v503_v40, %v375_v28 }
 0x1f6   :  { %2746 = vtanh.f32 %v509_v39 }
 0x1f7   :  { %2748 = vtanh.f32 %v504_v41  ;;  %v2180_v43 = vpop.f32.mrb[2].mxu1  ;;  %v431_v41 = vpop.permute.xlu1 %430 }
 0x1f8   :  { %v519_v45 = vadd.f32 %v2180_v43, %v387_v32  ;;  %v513_v46 = vpop.f32.mrb[3].mxu1 }
 0x1f9   :  { %v514_v47 = vadd.f32 %v513_v46, %v383_v33 }
 0x1fa   :  { %2750 = vtanh.f32 %v519_v45 }
 0x1fb   :  { %2752 = vtanh.f32 %v514_v47  ;;  %v2183_v48 = vpop.f32.mrb[4].mxu1 }
 0x1fc   :  { %v529_v49 = vadd.f32 %v2183_v48, %v395_v36  ;;  %v523_v50 = vpop.f32.mrb[5].mxu1 }
 0x1fd   :  { %v524_v52 = vadd.f32 %v523_v50, %v391_v37 }
 0x1fe   :  { %2754 = vtanh.f32 %v529_v49 }
 0x1ff   :  { %2756 = vtanh.f32 %v524_v52  ;;  %v2186_v54 = vpop.f32.mrb[6].mxu1 }
 0x200   :  { %v2747_v55 = vpop.eup %2746  ;;  %v539_v56 = vadd.f32 %v2186_v54, %v403_v42  ;;  %v533_v57 = vpop.f32.mrb[7].mxu1 }
 0x201   :  { %v2749_v58 = vpop.eup %2748  ;;  %v534_v59 = vadd.f32 %v533_v57, %v399_v44  ;;  %v601_v57 = vld [vmem:[#allocation2 + $0x90] sm:$0xff] }
 0x202   :  { %2758 = vtanh.f32 %v539_v56  ;;  %v2515_v60 = vpack.c.bf16 %v2747_v55, %v2749_v58  ;;  %v600_v56 = vld [vmem:[#allocation2 + $0x88] sm:$0xff]  ;;  %v602_v58 = vld [vmem:[#allocation2 + $0x98] sm:$0xff] }
 0x203   :  { %2760 = vtanh.f32 %v534_v59  ;;  %v2189_v62 = vpop.f32.mrb[8].mxu1  ;;  %v603_v59 = vld [vmem:[#allocation2 + $0xa0] sm:$0xff] }
 0x204   :  { %v2751_v63 = vpop.eup %2750  ;;  %v549_v1 = vadd.f32 %v2189_v62, %v411_v51  ;;  %v543_v2 = vpop.f32.mrb[9].mxu1  ;;  %2516 = vmatprep.subr.bf16.mxu0 %v2515_v60  ;;  %v606_v62 = vld [vmem:[#allocation2 + $0xb8] sm:$0xff] }
 0x205   :  { %v2753_v3 = vpop.eup %2752  ;;  %v544_v4 = vadd.f32 %v543_v2, %v407_v53  ;;  %2518 = vmatpush3.bf16.msra.mxu0 %v2515_v60  ;;  %v604_v60 = vld [vmem:[#allocation2 + $0xa8] sm:$0xff]  ;;  %v610_v2 = vld [vmem:[#allocation2 + $0xd8] sm:$0xff] }
 0x206   :  { %2762 = vtanh.f32 %v549_v1  ;;  %v2519_v5 = vpack.c.bf16 %v2751_v63, %v2753_v3  ;;  %v607_v63 = vld [vmem:[#allocation2 + $0xc0] sm:$0xff]  ;;  %v609_v1 = vld [vmem:[#allocation2 + $0xd0] sm:$0xff] }
 0x207   :  { %2764 = vtanh.f32 %v544_v4  ;;  %v2192_v6 = vpop.f32.mrb[10].mxu1  ;;  %v611_v3 = vld [vmem:[#allocation2 + $0xe0] sm:$0xff]  ;;  %v612_v4 = vld [vmem:[#allocation2 + $0xe8] sm:$0xff] }
 0x208   :  { %v2755_v9 = vpop.eup %2754  ;;  %v559_v12 = vadd.f32 %v2192_v6, %v419_v61  ;;  %v553_v13 = vpop.f32.mrb[11].mxu1  ;;  %2520 = vmatprep.subr.bf16.mxu0 %v2519_v5  ;;  %v605_v61 = vld [vmem:[#allocation2 + $0xb0] sm:$0xff]  ;;  %v614_v6 = vld [vmem:[#allocation2 + $0xf8] sm:$0xff] }
 0x209   :  { %v2757_v16 = vpop.eup %2756  ;;  %v554_v20 = vadd.f32 %v553_v13, %v415_v0  ;;  %2522 = vmatpush3.bf16.msra.mxu0 %v2519_v5  ;;  %v608_v0 = vld [vmem:[#allocation2 + $0xc8] sm:$0xff]  ;;  %v613_v5 = vld [vmem:[#allocation2 + $0xf0] sm:$0xff]  ;;  %v2982_v13 = vmov 4  }
 0x20a   :  { %2766 = vtanh.f32 %v559_v12  ;;  %v2523_v24 = vpack.c.bf16 %v2755_v9, %v2757_v16  ;;  %v841_v9 = vld [vmem:[#allocation2 + $0x100] sm:$0xff]  ;;  %v2981_v12 = vmov 3  }
 0x20b   :  { %2768 = vtanh.f32 %v554_v20  ;;  %v2195_v25 = vpop.f32.mrb[12].mxu1  ;;  %2287 = vmatprep.mubr.f32.mxu1 %v841_v9  ;;  %2694 = vset.pattern.permute.xlu1 %v2981_v12 }
 0x20c   :  { %v2759_v28 = vpop.eup %2758  ;;  %v569_v29 = vadd.f32 %v2195_v25, %v427_v17  ;;  %v563_v32 = vpop.f32.mrb[13].mxu1  ;;  %2524 = vmatprep.subr.bf16.mxu0 %v2523_v24  ;;  %2693 = vset.pattern.permute.xlu0 %v2981_v12 }
 0x20d   :  { %v2761_v33 = vpop.eup %2760  ;;  %v564_v36 = vadd.f32 %v563_v32, %v423_v21  ;;  %2526 = vmatpush3.bf16.msra.mxu0 %v2523_v24  ;;  %862 = vperm.xlu1 %2694, %v3058_v10  }
 0x20e   :  { %2770 = vtanh.f32 %v569_v29  ;;  %v2527_v37 = vpack.c.bf16 %v2759_v28, %v2761_v33  ;;  %858 = vperm.xlu0 %2693, %v3043_v7  }
 0x20f   :  { %2772 = vtanh.f32 %v564_v36  ;;  %v2198_v39 = vpop.f32.mrb[14].mxu1 }
 0x210   :  { %v2763_v40 = vpop.eup %2762  ;;  %v579_v42 = vadd.f32 %v2198_v39, %v435_v38  ;;  %v573_v43 = vpop.f32.mrb[15].mxu1  ;;  %2528 = vmatprep.subr.bf16.mxu0 %v2527_v37 }
 0x211   :  { %v2765_v44 = vpop.eup %2764  ;;  %v574_v45 = vadd.f32 %v573_v43, %v431_v41  ;;  %2530 = vmatpush3.bf16.msra.mxu0 %v2527_v37  ;;  %866 = vperm.xlu1 %2694, %v3048_v8  }
 0x212   :  { %2774 = vtanh.f32 %v579_v42  ;;  %v2531_v46 = vpack.c.bf16 %v2763_v40, %v2765_v44  ;;  %870 = vperm.xlu0 %2693, %v3063_v11  }
 0x213   :  { %2776 = vtanh.f32 %v574_v45 }
 0x214   :  { %v2767_v47 = vpop.eup %2766  ;;  %2532 = vmatprep.subr.bf16.mxu0 %v2531_v46 }
 0x215   :  { %v2769_v48 = vpop.eup %2768  ;;  %2534 = vmatpush3.bf16.msra.mxu0 %v2531_v46  ;;  %2695 = vset.pattern.permute.xlu1 %v2982_v13 }
 0x216   :  { %v2535_v49 = vpack.c.bf16 %v2767_v47, %v2769_v48  ;;  %882 = vperm.xlu0 %2693, %v3098_v18   ;;  %1087 = vperm.xlu1 %2695, %v3043_v7   ;;  %v617_v7 = vpop.permute.xlu1 %616 }
 0x218   :  { %v2771_v50 = vpop.eup %2770  ;;  %2536 = vmatprep.subr.bf16.mxu0 %v2535_v49 }
 0x219   :  { %v2773_v51 = vpop.eup %2772  ;;  %2538 = vmatpush3.bf16.msra.mxu0 %v2535_v49 }
 0x21a   :  { %v2539_v52 = vpack.c.bf16 %v2771_v50, %v2773_v51  ;;  %898 = vperm.xlu0 %2693, %v3138_v26   ;;  %2696 = vset.pattern.permute.xlu1 %v2981_v12 }
 0x21b   :  { %874 = vperm.xlu1 %2696, %v3078_v14  }
 0x21c   :  { %v2775_v53 = vpop.eup %2774  ;;  %2540 = vmatprep.subr.bf16.mxu0 %v2539_v52 }
 0x21d   :  { %v2777_v54 = vpop.eup %2776  ;;  %2542 = vmatpush3.bf16.msra.mxu0 %v2539_v52 }
 0x21e   :  { %v2543_v55 = vpack.c.bf16 %v2775_v53, %v2777_v54  ;;  %914 = vperm.xlu0 %2693, %v3178_v34  }
 0x21f   :  { %878 = vperm.xlu1 %2696, %v3083_v15  }
 0x220   :  { %2544 = vmatprep.subr.bf16.mxu0 %v2543_v55 }
 0x221   :  { %2546 = vmatpush3.bf16.msra.mxu0 %v2543_v55 }
 0x222   :  { %2706 = vset.pattern.permute.xlu0 %v2982_v13 }
 0x223   :  { %1091 = vperm.xlu0 %2706, %v3058_v10   ;;  %2697 = vset.pattern.permute.xlu1 %v2982_v13 }
 0x224   :  { %2232 = vmatmul.mubr.f32.vlgmr.msra.gmra.mrb[16].mxu0 %v600_v56  ;;  %1099 = vperm.xlu1 %2697, %v3063_v11   ;;  %v621_v11 = vpop.permute.xlu0 %620 }
 0x225   :  { %2234 = vmatprep.mubr.f32.mxu0 %v601_v57 }
 0x227   :  { %1095 = vperm.xlu0 %2706, %v3048_v8   ;;  %v625_v8 = vpop.permute.xlu1 %624 }
 0x228   :  { %2235 = vmatmul.mubr.f32.gmra.mrb[18].mxu0 %v602_v58  ;;  %2698 = vset.pattern.permute.xlu1 %v2981_v12 }
 0x229   :  { %2237 = vmatprep.mubr.f32.mxu0 %v603_v59  ;;  %886 = vperm.xlu1 %2698, %v3103_v19  }
 0x22b   :  { %1107 = vperm.xlu0 %2706, %v3083_v15   ;;  %v629_v10 = vpop.permute.xlu1 %628  ;;  %v633_v15 = vpop.permute.xlu0 %632 }
 0x22c   :  { %2238 = vmatmul.mubr.f32.gmra.mrb[20].mxu0 %v604_v60 }
 0x22d   :  { %2240 = vmatprep.mubr.f32.mxu0 %v605_v61  ;;  %2699 = vset.pattern.permute.xlu1 %v2982_v13 }
 0x22e   :  { %1103 = vperm.xlu1 %2699, %v3078_v14  }
 0x22f   :  { %1111 = vperm.xlu0 %2706, %v3098_v18   ;;  %v637_v14 = vpop.permute.xlu1 %636  ;;  %v641_v20 = vpop.permute.xlu0 %640 }
 0x230   :  { %2241 = vmatmul.mubr.f32.gmra.mrb[22].mxu0 %v606_v62 }
 0x231   :  { %2243 = vmatprep.mubr.f32.mxu0 %v607_v63 }
 0x232   :  { %2700 = vset.pattern.permute.xlu1 %v2981_v12 }
 0x233   :  { %1123 = vperm.xlu0 %2706, %v3123_v23   ;;  %890 = vperm.xlu1 %2700, %v3118_v22   ;;  %v645_v16 = vpop.permute.xlu1 %644  ;;  %v649_v36 = vpop.permute.xlu0 %648 }
 0x234   :  { %2244 = vmatmul.mubr.f32.gmra.mrb[24].mxu0 %v608_v0 }
 0x235   :  { %2246 = vmatprep.mubr.f32.mxu0 %v609_v1 }
 0x237   :  { %1127 = vperm.xlu0 %2706, %v3138_v26   ;;  %894 = vperm.xlu1 %2700, %v3123_v23   ;;  %v653_v32 = vpop.permute.xlu1 %652 }
 0x238   :  { %2247 = vmatmul.mubr.f32.gmra.mrb[26].mxu0 %v610_v2 }
 0x239   :  { %2249 = vmatprep.mubr.f32.mxu0 %v611_v3 }
 0x23b   :  { %1139 = vperm.xlu0 %2706, %v3163_v31   ;;  %2701 = vset.pattern.permute.xlu1 %v2982_v13  ;;  %v661_v43 = vpop.permute.xlu1 %660 }
 0x23c   :  { %2250 = vmatmul.mubr.f32.gmra.mrb[28].mxu0 %v612_v4  ;;  %1115 = vperm.xlu1 %2701, %v3103_v19  }
 0x23d   :  { %2252 = vmatprep.mubr.f32.mxu0 %v613_v5 }
 0x23f   :  { %v669_v56 = vpop.permute.xlu1 %668 }
 0x240   :  { %2253 = vmatmul.mubr.f32.gmra.mrb[30].mxu0 %v614_v6  ;;  %2702 = vset.pattern.permute.xlu1 %v2981_v12 }
 0x241   :  { %902 = vperm.xlu1 %2702, %v3143_v27  }
 0x243   :  { %v677_v2 = vpop.permute.xlu1 %676 }
 0x245   :  { %2703 = vset.pattern.permute.xlu1 %v2982_v13 }
 0x246   :  { %1119 = vperm.xlu1 %2703, %v3118_v22  }
 0x24a   :  { %2704 = vset.pattern.permute.xlu1 %v2981_v12 }
 0x24b   :  { %906 = vperm.xlu1 %2704, %v3158_v30  }
 0x24f   :  { %910 = vperm.xlu1 %2704, %v3163_v31  }
 0x253   :  { %2705 = vset.pattern.permute.xlu1 %v2982_v13 }
 0x254   :  { %1131 = vperm.xlu1 %2705, %v3143_v27   ;;  %v657_v27 = vpop.permute.xlu0 %656 }
 0x258   :  { %2707 = vset.pattern.permute.xlu1 %v2981_v12  ;;  %v665_v58 = vpop.permute.xlu0 %664 }
 0x259   :  { %918 = vperm.xlu1 %2707, %v3183_v35  }
 0x25c   :  { %v673_v5 = vpop.permute.xlu0 %672 }
 0x25d   :  { %2708 = vset.pattern.permute.xlu1 %v2982_v13 }
 0x25e   :  { %1135 = vperm.xlu1 %2708, %v3158_v30  }
 0x262   :  { %1143 = vperm.xlu1 %2708, %v3178_v34  }
 0x266   :  { %1147 = vperm.xlu1 %2708, %v3183_v35  }
 0x2f7   :  { %v2233_v18 = vpop.f32.mrb[16].mxu0 }
 0x2f8   :  { %v751_v23 = vadd.f32 %v2233_v18, %v621_v11  ;;  %v745_v26 = vpop.f32.mrb[17].mxu0 }
 0x2f9   :  { %v746_v19 = vadd.f32 %v745_v26, %v617_v7  ;;  %v842_v26 = vld [vmem:[#allocation2 + $0x108] sm:$0xff] }
 0x2fa   :  { %2778 = vtanh.f32 %v751_v23 }
 0x2fb   :  { %2780 = vtanh.f32 %v746_v19  ;;  %v2236_v17 = vpop.f32.mrb[18].mxu0  ;;  %v843_v19 = vld [vmem:[#allocation2 + $0x110] sm:$0xff] }
 0x2fc   :  { %v761_v21 = vadd.f32 %v2236_v17, %v629_v10  ;;  %v755_v24 = vpop.f32.mrb[19].mxu0  ;;  %v845_v17 = vld [vmem:[#allocation2 + $0x120] sm:$0xff] }
 0x2fd   :  { %v756_v22 = vadd.f32 %v755_v24, %v625_v8  ;;  %v848_v24 = vld [vmem:[#allocation2 + $0x138] sm:$0xff] }
 0x2fe   :  { %2782 = vtanh.f32 %v761_v21  ;;  %v847_v21 = vld [vmem:[#allocation2 + $0x130] sm:$0xff] }
 0x2ff   :  { %2784 = vtanh.f32 %v756_v22  ;;  %v2239_v25 = vpop.f32.mrb[20].mxu0  ;;  %v849_v22 = vld [vmem:[#allocation2 + $0x140] sm:$0xff] }
 0x300   :  { %v771_v28 = vadd.f32 %v2239_v25, %v637_v14  ;;  %v765_v29 = vpop.f32.mrb[21].mxu0  ;;  %v850_v25 = vld [vmem:[#allocation2 + $0x148] sm:$0xff] }
 0x301   :  { %v766_v33 = vadd.f32 %v765_v29, %v633_v15  ;;  %v852_v29 = vld [vmem:[#allocation2 + $0x158] sm:$0xff] }
 0x302   :  { %2786 = vtanh.f32 %v771_v28  ;;  %v851_v28 = vld [vmem:[#allocation2 + $0x150] sm:$0xff] }
 0x303   :  { %2788 = vtanh.f32 %v766_v33  ;;  %v2242_v37 = vpop.f32.mrb[22].mxu0  ;;  %v854_v33 = vld [vmem:[#allocation2 + $0x168] sm:$0xff] }
 0x304   :  { %v2779_v38 = vpop.eup %2778  ;;  %v781_v39 = vadd.f32 %v2242_v37, %v645_v16  ;;  %v775_v40 = vpop.f32.mrb[23].mxu0  ;;  %v844_v16 = vld [vmem:[#allocation2 + $0x118] sm:$0xff] }
 0x305   :  { %v2781_v31 = vpop.eup %2780  ;;  %v776_v41 = vadd.f32 %v775_v40, %v641_v20  ;;  %v846_v20 = vld [vmem:[#allocation2 + $0x128] sm:$0xff]  ;;  %v856_v37 = vld [vmem:[#allocation2 + $0x178] sm:$0xff] }
 0x306   :  { %2790 = vtanh.f32 %v781_v39  ;;  %v2547_v42 = vpack.c.bf16 %v2779_v38, %v2781_v31  ;;  %v1183_v38 = vld [vmem:[#allocation2 + $0x180] sm:$0xff]  ;;  %v863_v39 = vpop.permute.xlu1 %862 }
 0x307   :  { %2792 = vtanh.f32 %v776_v41  ;;  %v2245_v44 = vpop.f32.mrb[24].mxu0  ;;  %2343 = vmatprep.mubr.f32.mxu0 %v1183_v38 }
 0x308   :  { %v2783_v45 = vpop.eup %2782  ;;  %v791_v46 = vadd.f32 %v2245_v44, %v653_v32  ;;  %v785_v47 = vpop.f32.mrb[25].mxu0  ;;  %2548 = vmatprep.subr.bf16.mxu1 %v2547_v42  ;;  %v853_v32 = vld [vmem:[#allocation2 + $0x160] sm:$0xff]  ;;  %v2983_v44 = vmov 5  }
 0x309   :  { %v2785_v48 = vpop.eup %2784  ;;  %v786_v49 = vadd.f32 %v785_v47, %v649_v36  ;;  %2550 = vmatpush3.bf16.msra.mxu1 %v2547_v42  ;;  %v855_v36 = vld [vmem:[#allocation2 + $0x170] sm:$0xff]  ;;  %2710 = vset.pattern.permute.xlu1 %v2983_v44 }
 0x30a   :  { %2794 = vtanh.f32 %v791_v46  ;;  %v2551_v50 = vpack.c.bf16 %v2783_v45, %v2785_v48  ;;  %v3273_v40 = vpop.permute.xlu1 %866  ;;  %2709 = vset.pattern.permute.xlu0 %v2983_v44  ;;  %v3286_v45 = vld [vmem:[%s3470_s3 + $0x8] sm:$0xff]  ;;  %v3300_v47 = vld [vmem:[%s3470_s3 + $0x10] sm:$0xff]  ;;  %v3306_v48 = vld [vmem:[%s3470_s3 + $0x18] sm:$0xff] }
 0x30b   :  { %2796 = vtanh.f32 %v786_v49  ;;  %v2248_v51 = vpop.f32.mrb[26].mxu0  ;;  %1204 = vperm.xlu1 %2710, %v3286_v45   ;;  %v859_v49 = vpop.permute.xlu0 %858 }
 0x30c   :  { %v2787_v52 = vpop.eup %2786  ;;  %v801_v53 = vadd.f32 %v2248_v51, %v661_v43  ;;  %v795_v54 = vpop.f32.mrb[27].mxu0  ;;  %2552 = vmatprep.subr.bf16.mxu1 %v2551_v50  ;;  %v3314_v51 = vld [vmem:[%s3470_s3 + $0x20] sm:$0xff] }
 0x30d   :  { %v2789_v55 = vpop.eup %2788  ;;  %v796_v57 = vadd.f32 %v795_v54, %v657_v27  ;;  %2554 = vmatpush3.bf16.msra.mxu1 %v2551_v50  ;;  %v3292_v27 = vld [vmem:[%s3470_s3] sm:$0xff]  ;;  %v3332_v54 = vld [vmem:[%s3470_s3 + $0x38] sm:$0xff] }
 0x30e   :  { %2798 = vtanh.f32 %v801_v53  ;;  %v2555_v59 = vpack.c.bf16 %v2787_v52, %v2789_v55  ;;  %v3275_v31 = vpop.permute.xlu1 %1087  ;;  %1200 = vperm.xlu0 %2709, %v3292_v27   ;;  %v3320_v52 = vld [vmem:[%s3470_s3 + $0x28] sm:$0xff]  ;;  %v3326_v53 = vld [vmem:[%s3470_s3 + $0x30] sm:$0xff] }
 0x30f   :  { %2800 = vtanh.f32 %v796_v57  ;;  %v2251_v60 = vpop.f32.mrb[28].mxu0  ;;  %1208 = vperm.xlu1 %2710, %v3300_v47   ;;  %v871_v55 = vpop.permute.xlu0 %870  ;;  %v3340_v57 = vld [vmem:[%s3470_s3 + $0x40] sm:$0xff] }
 0x310   :  { %v2791_v61 = vpop.eup %2790  ;;  %v811_v62 = vadd.f32 %v2251_v60, %v669_v56  ;;  %v805_v63 = vpop.f32.mrb[29].mxu0  ;;  %2556 = vmatprep.subr.bf16.mxu1 %v2555_v59 }
 0x311   :  { %v2793_v30 = vpop.eup %2792  ;;  %v806_v0 = vadd.f32 %v805_v63, %v665_v58  ;;  %2558 = vmatpush3.bf16.msra.mxu1 %v2555_v59  ;;  %v3346_v58 = vld [vmem:[%s3470_s3 + $0x48] sm:$0xff] }
 0x312   :  { %2802 = vtanh.f32 %v811_v62  ;;  %v2559_v1 = vpack.c.bf16 %v2791_v61, %v2793_v30  ;;  %v3277_v41 = vpop.permute.xlu1 %874  ;;  %1212 = vperm.xlu0 %2709, %v3306_v48   ;;  %v3354_v61 = vld [vmem:[%s3470_s3 + $0x50] sm:$0xff]  ;;  %v3360_v62 = vld [vmem:[%s3470_s3 + $0x58] sm:$0xff]  ;;  %v3368_v30 = vld [vmem:[%s3470_s3 + $0x60] sm:$0xff] }
 0x313   :  { %2804 = vtanh.f32 %v806_v0  ;;  %v2254_v3 = vpop.f32.mrb[30].mxu0  ;;  %1216 = vperm.xlu1 %2710, %v3314_v51   ;;  %v883_v59 = vpop.permute.xlu0 %882  ;;  %v3374_v0 = vld [vmem:[%s3470_s3 + $0x68] sm:$0xff] }
 0x314   :  { %v2795_v4 = vpop.eup %2794  ;;  %v821_v6 = vadd.f32 %v2254_v3, %v677_v2  ;;  %v815_v9 = vpop.f32.mrb[31].mxu0  ;;  %2560 = vmatprep.subr.bf16.mxu1 %v2559_v1  ;;  %v3382_v2 = vld [vmem:[%s3470_s3 + $0x70] sm:$0xff]  ;;  %v3388_v3 = vld [vmem:[%s3470_s3 + $0x78] sm:$0xff] }
 0x315   :  { %v2797_v34 = vpop.eup %2796  ;;  %v816_v12 = vadd.f32 %v815_v9, %v673_v5  ;;  %2562 = vmatpush3.bf16.msra.mxu1 %v2559_v1  ;;  %v921_v5 = vlaneseq }
 0x316   :  { %2806 = vtanh.f32 %v821_v6  ;;  %v2563_v13 = vpack.c.bf16 %v2795_v4, %v2797_v34  ;;  %v3279_v42 = vpop.permute.xlu1 %878  ;;  %1220 = vperm.xlu0 %2709, %v3320_v52  }
 0x317   :  { %2808 = vtanh.f32 %v816_v12  ;;  %1224 = vperm.xlu1 %2710, %v3326_v53   ;;  %v3377_v1 = vpop.permute.xlu0 %898  ;;  %v922_v9 = vshrl.u32 %v921_v5, 7 }
 0x318   :  { %v2799_v7 = vpop.eup %2798  ;;  %2564 = vmatprep.subr.bf16.mxu1 %v2563_v13 }
 0x319   :  { %v2801_v8 = vpop.eup %2800  ;;  %2566 = vmatpush3.bf16.msra.mxu1 %v2563_v13  ;;  %v923_v13 = vsub.s32 0, %v922_v9 }
 0x31a   :  { %v2567_v10 = vpack.c.bf16 %v2799_v7, %v2801_v8  ;;  %v3281_v43 = vpop.permute.xlu1 %1099  ;;  %1228 = vperm.xlu0 %2709, %v3332_v54   ;;  %v2926_v8 = vld [vmem:[%s3467_s0 + $0x10] sm:$0xff]  ;;  %s2986_s0 = smov [#allocation5]  }
 0x31b   :  { %1232 = vperm.xlu1 %2710, %v3340_v57   ;;  %v3393_v6 = vpop.permute.xlu0 %914  ;;  %s1876_s3 = sshll.u32 %s2986_s0, 4  ;;  %s1877_s3 = int_to_ptr.vmem [resolvable:$true] %s1876_s3 }
 0x31c   :  { %v2803_v11 = vpop.eup %2802  ;;  %2568 = vmatprep.subr.bf16.mxu1 %v2567_v10  ;;  %s2949_s23 = scalar_lea.vmem %s1877_s3, 16  ;;  %s2953_s24 = scalar_lea.vmem %s1877_s3, 32 }
 0x31d   :  { %v2805_v14 = vpop.eup %2804  ;;  %2570 = vmatpush3.bf16.msra.mxu1 %v2567_v10  ;;  %v3402_v10 = vrot.slane %v2926_v8, %v923_v13  ;;  %p2950_p8 = scmp.ne.s32.totalorder %s1877_s3, %s2949_s23  ;;  %p2954_p9 = scmp.lt.s32.totalorder %s1877_s3, %s1877_s3 }
 0x31e   :  { %v2571_v35 = vpack.c.bf16 %v2803_v11, %v2805_v14  ;;  %v3295_v46 = vpop.permute.xlu1 %886  ;;  %1236 = vperm.xlu0 %2709, %v3346_v58   ;;  %p2955_p10 = scmp.lt.s32.totalorder %s2953_s24, %s2949_s23 }
 0x31f   :  { %1240 = vperm.xlu1 %2710, %v3354_v61   ;;  %v1092_v12 = vpop.permute.xlu0 %1091  ;;  %v926_v14 = vmul.f32 %v3402_v10, %v863_v39  ;;  %v931_v9 = vmul.f32 %v3402_v10, %v883_v59 }
 0x320   :  { %v2807_v15 = vpop.eup %2806  ;;  %2572 = vmatprep.subr.bf16.mxu1 %v2571_v35  ;;  %p2956_p11 = por %p2955_p10, %p2954_p9 }
 0x321   :  { %v2809_v18 = vpop.eup %2808  ;;  %2574 = vmatpush3.bf16.msra.mxu1 %v2571_v35  ;;  %v925_v35 = vmul.f32 %v3402_v10, %v859_v49 }
 0x322   :  { %v2575_v23 = vpack.c.bf16 %v2807_v15, %v2809_v18  ;;  %v3309_v50 = vpop.permute.xlu1 %1103  ;;  %1244 = vperm.xlu0 %2709, %v3360_v62   ;;  %p2957_p12 = pnand %p2956_p11, %p2950_p8 }
 0x323   :  { %1248 = vperm.xlu1 %2710, %v3368_v30   ;;  %v1096_v11 = vpop.permute.xlu0 %1095 }
 0x324   :  { %2576 = vmatprep.subr.bf16.mxu1 %v2575_v23 }
 0x325   :  { %2578 = vmatpush3.bf16.msra.mxu1 %v2575_v23 }
 0x326   :  { %v3335_v56 = vpop.permute.xlu1 %890  ;;  %1252 = vperm.xlu0 %2709, %v3374_v0  }
 0x327   :  { %1256 = vperm.xlu1 %2710, %v3382_v2   ;;  %v933_v59 = vmul.f32 %v3402_v10, %v3335_v56 }
 0x328   :  { %2288 = vmatmul.mubr.f32.vlgmr.msra.gmra.mrb[16].mxu1 %v842_v26 }
 0x329   :  { %2290 = vmatprep.mubr.f32.mxu1 %v843_v19  ;;  %v1108_v19 = vpop.permute.xlu0 %1107 }
 0x32a   :  { %v3349_v60 = vpop.permute.xlu1 %894  ;;  %1260 = vperm.xlu0 %2709, %v3388_v3  }
 0x32c   :  { %2291 = vmatmul.mubr.f32.gmra.mrb[18].mxu1 %v844_v16 }
 0x32d   :  { %2293 = vmatprep.mubr.f32.mxu1 %v845_v17  ;;  %v928_v17 = vmul.f32 %v3402_v10, %v871_v55  ;;  %v1112_v38 = vpop.permute.xlu0 %1111  ;;  %v932_v55 = vmul.f32 %v3402_v10, %v3295_v46 }
 0x32e   :  { %v3363_v63 = vpop.permute.xlu1 %1115 }
 0x330   :  { %2294 = vmatmul.mubr.f32.gmra.mrb[20].mxu1 %v846_v20 }
 0x331   :  { %2296 = vmatprep.mubr.f32.mxu1 %v847_v21  ;;  %v927_v21 = vmul.f32 %v3402_v10, %v3273_v40  ;;  %v1124_v8 = vpop.permute.xlu0 %1123 }
 0x332   :  { %v3391_v4 = vpop.permute.xlu1 %902 }
 0x334   :  { %2297 = vmatmul.mubr.f32.gmra.mrb[22].mxu1 %v848_v24 }
 0x335   :  { %2299 = vmatprep.mubr.f32.mxu1 %v849_v22  ;;  %v1128_v56 = vpop.permute.xlu0 %1127 }
 0x336   :  { %v3395_v34 = vpop.permute.xlu1 %1119 }
 0x338   :  { %2300 = vmatmul.mubr.f32.gmra.mrb[24].mxu1 %v850_v25 }
 0x339   :  { %2302 = vmatprep.mubr.f32.mxu1 %v851_v28 }
 0x33a   :  { %v3397_v7 = vpop.permute.xlu1 %906 }
 0x33c   :  { %2303 = vmatmul.mubr.f32.gmra.mrb[26].mxu1 %v852_v29 }
 0x33d   :  { %2305 = vmatprep.mubr.f32.mxu1 %v853_v32 }
 0x33e   :  { %v3406_v18 = vpop.permute.xlu1 %910 }
 0x340   :  { %2306 = vmatmul.mubr.f32.gmra.mrb[28].mxu1 %v854_v33  ;;  %v930_v33 = vmul.f32 %v3402_v10, %v3279_v42 }
 0x341   :  { %2308 = vmatprep.mubr.f32.mxu1 %v855_v36 }
 0x342   :  { %v1132_v32 = vpop.permute.xlu1 %1131 }
 0x344   :  { %2309 = vmatmul.mubr.f32.gmra.mrb[30].mxu1 %v856_v37  ;;  %v929_v37 = vmul.f32 %v3402_v10, %v3277_v41 }
 0x3fb   :  { %v2289_v15 = vpop.f32.mrb[16].mxu1 }
 0x3fc   :  { %v1013_v23 = vadd.f32 %v2289_v15, %v926_v14  ;;  %v1007_v26 = vpop.f32.mrb[17].mxu1 }
 0x3fd   :  { %v1008_v16 = vadd.f32 %v1007_v26, %v925_v35  ;;  %v934_v35 = vmul.f32 %v3402_v10, %v3349_v60 }
 0x3fe   :  { %v1151_v20 = vadd.f32 %v1092_v12, %v1013_v23 }
 0x3ff   :  { %v1150_v24 = vadd.f32 %v3275_v31, %v1008_v16  ;;  %v2292_v22 = vpop.f32.mrb[18].mxu1 }
 0x400   :  { %2810 = vtanh.f32 %v1151_v20  ;;  %v1023_v25 = vadd.f32 %v2292_v22, %v928_v17  ;;  %v1017_v28 = vpop.f32.mrb[19].mxu1  ;;  %v935_v22 = vmul.f32 %v3402_v10, %v3377_v1  ;;  %v937_v1 = vmul.f32 %v3402_v10, %v3397_v7 }
 0x401   :  { %2812 = vtanh.f32 %v1150_v24  ;;  %v1018_v29 = vadd.f32 %v1017_v28, %v927_v21  ;;  %v936_v24 = vmul.f32 %v3402_v10, %v3391_v4  ;;  %v938_v4 = vmul.f32 %v3402_v10, %v3406_v18 }
 0x402   :  { %v1153_v36 = vadd.f32 %v3281_v43, %v1023_v25  ;;  %v919_v43 = vpop.permute.xlu1 %918  ;;  %v939_v7 = vmul.f32 %v3402_v10, %v3393_v6 }
 0x403   :  { %v1152_v39 = vadd.f32 %v1096_v11, %v1018_v29  ;;  %v2295_v40 = vpop.f32.mrb[20].mxu1  ;;  %v940_v18 = vmul.f32 %v3402_v10, %v919_v43 }
 0x404   :  { %2814 = vtanh.f32 %v1153_v36  ;;  %v1033_v31 = vadd.f32 %v2295_v40, %v930_v33  ;;  %v1027_v44 = vpop.f32.mrb[21].mxu1 }
 0x405   :  { %2816 = vtanh.f32 %v1152_v39  ;;  %v1028_v49 = vadd.f32 %v1027_v44, %v929_v37 }
 0x406   :  { %v1155_v5 = vadd.f32 %v1108_v19, %v1033_v31  ;;  %v1136_v17 = vpop.permute.xlu1 %1135 }
 0x407   :  { %v1154_v42 = vadd.f32 %v3309_v50, %v1028_v49  ;;  %v2298_v12 = vpop.f32.mrb[22].mxu1 }
 0x408   :  { %2818 = vtanh.f32 %v1155_v5  ;;  %v1043_v41 = vadd.f32 %v2298_v12, %v932_v55  ;;  %v1037_v13 = vpop.f32.mrb[23].mxu1 }
 0x409   :  { %2820 = vtanh.f32 %v1154_v42  ;;  %v1038_v11 = vadd.f32 %v1037_v13, %v931_v9  ;;  %v1140_v9 = vpop.permute.xlu0 %1139 }
 0x40a   :  { %v2811_v14 = vpop.eup %2810  ;;  %v1157_v15 = vadd.f32 %v3363_v63, %v1043_v41  ;;  %v1144_v31 = vpop.permute.xlu1 %1143 }
 0x40b   :  { %v2813_v46 = vpop.eup %2812  ;;  %v1156_v23 = vadd.f32 %v1112_v38, %v1038_v11  ;;  %v2301_v50 = vpop.f32.mrb[24].mxu1 }
 0x40c   :  { %2822 = vtanh.f32 %v1157_v15  ;;  %v1053_v26 = vadd.f32 %v2301_v50, %v934_v35  ;;  %v1047_v19 = vpop.f32.mrb[25].mxu1  ;;  %v2579_v16 = vpack.c.bf16 %v2811_v14, %v2813_v46 }
 0x40d   :  { %2824 = vtanh.f32 %v1156_v23  ;;  %v1048_v20 = vadd.f32 %v1047_v19, %v933_v59 }
 0x40e   :  { %v2815_v21 = vpop.eup %2814  ;;  %v1159_v60 = vadd.f32 %v1124_v8, %v1053_v26  ;;  %2580 = vmatprep.subr.bf16.mxu0 %v2579_v16  ;;  %v1148_v15 = vpop.permute.xlu1 %1147 }
 0x40f   :  { %v2817_v63 = vpop.eup %2816  ;;  %v1158_v25 = vadd.f32 %v3395_v34, %v1048_v20  ;;  %v2304_v28 = vpop.f32.mrb[26].mxu1  ;;  %2582 = vmatpush3.bf16.msra.mxu0 %v2579_v16 }
 0x410   :  { %2826 = vtanh.f32 %v1159_v60  ;;  %v1063_v29 = vadd.f32 %v2304_v28, %v936_v24  ;;  %v1057_v33 = vpop.f32.mrb[27].mxu1  ;;  %v2583_v36 = vpack.c.bf16 %v2815_v21, %v2817_v63  ;;  %v1184_v63 = vld [vmem:[#allocation2 + $0x188] sm:$0xff] }
 0x411   :  { %2828 = vtanh.f32 %v1158_v25  ;;  %v1058_v37 = vadd.f32 %v1057_v33, %v935_v22  ;;  %v1185_v22 = vld [vmem:[#allocation2 + $0x190] sm:$0xff]  ;;  %v1187_v25 = vld [vmem:[#allocation2 + $0x1a0] sm:$0xff]  ;;  %v1188_v28 = vld [vmem:[#allocation2 + $0x1a8] sm:$0xff] }
 0x412   :  { %v2819_v38 = vpop.eup %2818  ;;  %v1161_v39 = vadd.f32 %v1132_v32, %v1063_v29  ;;  %2584 = vmatprep.subr.bf16.mxu0 %v2583_v36  ;;  %v1189_v29 = vld [vmem:[#allocation2 + $0x1b0] sm:$0xff]  ;;  %v1190_v33 = vld [vmem:[#allocation2 + $0x1b8] sm:$0xff] }
 0x413   :  { %v2821_v40 = vpop.eup %2820  ;;  %v1160_v34 = vadd.f32 %v1128_v56, %v1058_v37  ;;  %v2307_v44 = vpop.f32.mrb[28].mxu1  ;;  %2586 = vmatpush3.bf16.msra.mxu0 %v2583_v36  ;;  %v1186_v56 = vld [vmem:[#allocation2 + $0x198] sm:$0xff]  ;;  %v1191_v36 = vld [vmem:[#allocation2 + $0x1c0] sm:$0xff]  ;;  %v1192_v37 = vld [vmem:[#allocation2 + $0x1c8] sm:$0xff] }
 0x414   :  { %2830 = vtanh.f32 %v1161_v39  ;;  %v1073_v49 = vadd.f32 %v2307_v44, %v938_v4  ;;  %v1067_v55 = vpop.f32.mrb[29].mxu1  ;;  %v2587_v5 = vpack.c.bf16 %v2819_v38, %v2821_v40  ;;  %v1193_v38 = vld [vmem:[#allocation2 + $0x1d0] sm:$0xff]  ;;  %v1194_v4 = vld [vmem:[#allocation2 + $0x1d8] sm:$0xff]  ;;  %v1195_v39 = vld [vmem:[#allocation2 + $0x1e0] sm:$0xff]  ;;  %v2984_v44 = vmov 6  }
 0x415   :  { %2832 = vtanh.f32 %v1160_v34  ;;  %v1068_v42 = vadd.f32 %v1067_v55, %v937_v1  ;;  %v1196_v40 = vld [vmem:[#allocation2 + $0x1e8] sm:$0xff]  ;;  %v1197_v1 = vld [vmem:[#allocation2 + $0x1f0] sm:$0xff]  ;;  %v1425_v34 = vld [vmem:[#allocation2 + $0x200] sm:$0xff]  ;;  %2711 = vset.pattern.permute.xlu1 %v2984_v44  ;;  %2712 = vset.pattern.permute.xlu0 %v2984_v44 }
 0x416   :  { %v2823_v12 = vpop.eup %2822  ;;  %v1163_v32 = vadd.f32 %v1140_v9, %v1073_v49  ;;  %2588 = vmatprep.subr.bf16.mxu0 %v2587_v5  ;;  %2399 = vmatprep.mubr.f32.mxu1 %v1425_v34 }
 0x417   :  { %v2825_v41 = vpop.eup %2824  ;;  %v1162_v13 = vadd.f32 %v1136_v17, %v1068_v42  ;;  %v2310_v8 = vpop.f32.mrb[30].mxu1  ;;  %2590 = vmatpush3.bf16.msra.mxu0 %v2587_v5  ;;  %1442 = vperm.xlu1 %2711, %v3292_v27  }
 0x418   :  { %2834 = vtanh.f32 %v1163_v32  ;;  %v1083_v11 = vadd.f32 %v2310_v8, %v940_v18  ;;  %v1077_v14 = vpop.f32.mrb[31].mxu1  ;;  %v2591_v35 = vpack.c.bf16 %v2823_v12, %v2825_v41  ;;  %1446 = vperm.xlu0 %2712, %v3286_v45   ;;  %v1201_v45 = vpop.permute.xlu0 %1200 }
 0x419   :  { %2836 = vtanh.f32 %v1162_v13  ;;  %v1078_v46 = vadd.f32 %v1077_v14, %v939_v7 }
 0x41a   :  { %v2827_v59 = vpop.eup %2826  ;;  %v1165_v23 = vadd.f32 %v1148_v15, %v1083_v11  ;;  %2592 = vmatprep.subr.bf16.mxu0 %v2591_v35 }
 0x41b   :  { %v2829_v43 = vpop.eup %2828  ;;  %v1164_v50 = vadd.f32 %v1144_v31, %v1078_v46  ;;  %2594 = vmatpush3.bf16.msra.mxu0 %v2591_v35  ;;  %v1198_v31 = vld [vmem:[#allocation2 + $0x1f8] sm:$0xff]  ;;  %1450 = vperm.xlu1 %2711, %v3300_v47   ;;  %v1205_v47 = vpop.permute.xlu1 %1204 }
 0x41c   :  { %2838 = vtanh.f32 %v1165_v23  ;;  %v2595_v26 = vpack.c.bf16 %v2827_v59, %v2829_v43  ;;  %1458 = vperm.xlu0 %2712, %v3314_v51  }
 0x41d   :  { %2840 = vtanh.f32 %v1164_v50 }
 0x41e   :  { %v2831_v6 = vpop.eup %2830  ;;  %2596 = vmatprep.subr.bf16.mxu0 %v2595_v26 }
 0x41f   :  { %v2833_v10 = vpop.eup %2832  ;;  %2598 = vmatpush3.bf16.msra.mxu0 %v2595_v26  ;;  %1454 = vperm.xlu1 %2711, %v3306_v48   ;;  %v1213_v48 = vpop.permute.xlu0 %1212 }
 0x420   :  { %v2599_v19 = vpack.c.bf16 %v2831_v6, %v2833_v10  ;;  %1466 = vperm.xlu0 %2712, %v3326_v53   ;;  %v1209_v51 = vpop.permute.xlu1 %1208 }
 0x422   :  { %v2835_v16 = vpop.eup %2834  ;;  %2600 = vmatprep.subr.bf16.mxu0 %v2599_v19 }
 0x423   :  { %v2837_v17 = vpop.eup %2836  ;;  %2602 = vmatpush3.bf16.msra.mxu0 %v2599_v19  ;;  %1462 = vperm.xlu1 %2711, %v3320_v52   ;;  %v1221_v52 = vpop.permute.xlu0 %1220 }
 0x424   :  { %v2603_v20 = vpack.c.bf16 %v2835_v16, %v2837_v17  ;;  %1474 = vperm.xlu0 %2712, %v3340_v57   ;;  %v1217_v53 = vpop.permute.xlu1 %1216 }
 0x426   :  { %v2839_v21 = vpop.eup %2838  ;;  %2604 = vmatprep.subr.bf16.mxu0 %v2603_v20 }
 0x427   :  { %v2841_v24 = vpop.eup %2840  ;;  %2606 = vmatpush3.bf16.msra.mxu0 %v2603_v20  ;;  %1470 = vperm.xlu1 %2711, %v3332_v54  }
 0x428   :  { %v2607_v60 = vpack.c.bf16 %v2839_v21, %v2841_v24  ;;  %1482 = vperm.xlu0 %2712, %v3354_v61   ;;  %v1225_v49 = vpop.permute.xlu1 %1224 }
 0x42a   :  { %2608 = vmatprep.subr.bf16.mxu0 %v2607_v60 }
 0x42b   :  { %2610 = vmatpush3.bf16.msra.mxu0 %v2607_v60  ;;  %1478 = vperm.xlu1 %2711, %v3346_v58  }
 0x42c   :  { %1490 = vperm.xlu0 %2712, %v3368_v30   ;;  %v1229_v30 = vpop.permute.xlu0 %1228  ;;  %v1233_v18 = vpop.permute.xlu1 %1232 }
 0x42e   :  { %2344 = vmatmul.mubr.f32.vlgmr.msra.gmra.mrb[32].mxu0 %v1184_v63 }
 0x42f   :  { %2346 = vmatprep.mubr.f32.mxu0 %v1185_v22  ;;  %1486 = vperm.xlu1 %2711, %v3360_v62  }
 0x430   :  { %1498 = vperm.xlu0 %2712, %v3382_v2   ;;  %v1237_v42 = vpop.permute.xlu0 %1236  ;;  %v1241_v59 = vpop.permute.xlu1 %1240 }
 0x432   :  { %2347 = vmatmul.mubr.f32.gmra.mrb[34].mxu0 %v1186_v56 }
 0x433   :  { %2349 = vmatprep.mubr.f32.mxu0 %v1187_v25  ;;  %1494 = vperm.xlu1 %2711, %v3374_v0  }
 0x434   :  { %v1245_v35 = vpop.permute.xlu0 %1244  ;;  %v1249_v60 = vpop.permute.xlu1 %1248 }
 0x436   :  { %2350 = vmatmul.mubr.f32.gmra.mrb[36].mxu0 %v1188_v28 }
 0x437   :  { %2352 = vmatprep.mubr.f32.mxu0 %v1189_v29  ;;  %1502 = vperm.xlu1 %2711, %v3388_v3  }
 0x438   :  { %v1253_v21 = vpop.permute.xlu0 %1252 }
 0x43a   :  { %2353 = vmatmul.mubr.f32.gmra.mrb[38].mxu0 %v1190_v33 }
 0x43b   :  { %2355 = vmatprep.mubr.f32.mxu0 %v1191_v36 }
 0x43e   :  { %2356 = vmatmul.mubr.f32.gmra.mrb[40].mxu0 %v1192_v37  ;;  %v1261_v37 = vpop.permute.xlu0 %1260 }
 0x43f   :  { %2358 = vmatprep.mubr.f32.mxu0 %v1193_v38 }
 0x442   :  { %2359 = vmatmul.mubr.f32.gmra.mrb[42].mxu0 %v1194_v4 }
 0x443   :  { %2361 = vmatprep.mubr.f32.mxu0 %v1195_v39  ;;  %v1257_v39 = vpop.permute.xlu1 %1256 }
 0x446   :  { %2362 = vmatmul.mubr.f32.gmra.mrb[44].mxu0 %v1196_v40 }
 0x447   :  { %2364 = vmatprep.mubr.f32.mxu0 %v1197_v1 }
 0x44a   :  { %2365 = vmatmul.mubr.f32.gmra.mrb[46].mxu0 %v1198_v31 }
 0x501   :  { %v2345_v54 = vpop.f32.mrb[32].mxu0 }
 0x502   :  { %v1335_v57 = vadd.f32 %v2345_v54, %v1205_v47  ;;  %v1329_v61 = vpop.f32.mrb[33].mxu0 }
 0x503   :  { %v1330_v58 = vadd.f32 %v1329_v61, %v1201_v45 }
 0x504   :  { %2842 = vtanh.f32 %v1335_v57 }
 0x505   :  { %2844 = vtanh.f32 %v1330_v58  ;;  %v2348_v62 = vpop.f32.mrb[34].mxu0  ;;  %v1426_v58 = vld [vmem:[#allocation2 + $0x208] sm:$0xff] }
 0x506   :  { %v1345_v2 = vadd.f32 %v2348_v62, %v1213_v48  ;;  %v1339_v55 = vpop.f32.mrb[35].mxu0  ;;  %v1428_v62 = vld [vmem:[#allocation2 + $0x218] sm:$0xff] }
 0x507   :  { %v1340_v0 = vadd.f32 %v1339_v55, %v1209_v51  ;;  %v1431_v55 = vld [vmem:[#allocation2 + $0x230] sm:$0xff] }
 0x508   :  { %2846 = vtanh.f32 %v1345_v2  ;;  %v1430_v2 = vld [vmem:[#allocation2 + $0x228] sm:$0xff] }
 0x509   :  { %2848 = vtanh.f32 %v1340_v0  ;;  %v2351_v3 = vpop.f32.mrb[36].mxu0  ;;  %v1432_v0 = vld [vmem:[#allocation2 + $0x238] sm:$0xff] }
 0x50a   :  { %v1355_v5 = vadd.f32 %v2351_v3, %v1221_v52  ;;  %v1349_v9 = vpop.f32.mrb[37].mxu0  ;;  %v1433_v3 = vld [vmem:[#allocation2 + $0x240] sm:$0xff] }
 0x50b   :  { %v1350_v12 = vadd.f32 %v1349_v9, %v1217_v53  ;;  %v1435_v9 = vld [vmem:[#allocation2 + $0x250] sm:$0xff] }
 0x50c   :  { %2850 = vtanh.f32 %v1355_v5  ;;  %v1434_v5 = vld [vmem:[#allocation2 + $0x248] sm:$0xff] }
 0x50d   :  { %2852 = vtanh.f32 %v1350_v12  ;;  %v2354_v32 = vpop.f32.mrb[38].mxu0  ;;  %v1437_v12 = vld [vmem:[#allocation2 + $0x260] sm:$0xff] }
 0x50e   :  { %v2843_v41 = vpop.eup %2842  ;;  %v1365_v7 = vadd.f32 %v2354_v32, %v1229_v30  ;;  %v1359_v13 = vpop.f32.mrb[39].mxu0  ;;  %v1427_v30 = vld [vmem:[#allocation2 + $0x210] sm:$0xff] }
 0x50f   :  { %v2845_v8 = vpop.eup %2844  ;;  %v1360_v11 = vadd.f32 %v1359_v13, %v1225_v49  ;;  %v1429_v49 = vld [vmem:[#allocation2 + $0x220] sm:$0xff]  ;;  %v1439_v32 = vld [vmem:[#allocation2 + $0x270] sm:$0xff]  ;;  %v2985_v13 = vmov 7  }
 0x510   :  { %2854 = vtanh.f32 %v1365_v7  ;;  %v2611_v14 = vpack.c.bf16 %v2843_v41, %v2845_v8  ;;  %v1440_v41 = vld [vmem:[#allocation2 + $0x278] sm:$0xff]  ;;  %v1667_v7 = vld [vmem:[#allocation2 + $0x280] sm:$0xff]  ;;  %2713 = vset.pattern.permute.xlu0 %v2985_v13  ;;  %v1443_v8 = vpop.permute.xlu1 %1442 }
 0x511   :  { %2856 = vtanh.f32 %v1360_v11  ;;  %v2357_v15 = vpop.f32.mrb[40].mxu0  ;;  %2455 = vmatprep.mubr.f32.mxu0 %v1667_v7  ;;  %1684 = vperm.xlu0 %2713, %v3292_v27  }
 0x512   :  { %v2847_v46 = vpop.eup %2846  ;;  %v1375_v23 = vadd.f32 %v2357_v15, %v1237_v42  ;;  %v1369_v43 = vpop.f32.mrb[41].mxu0  ;;  %2612 = vmatprep.subr.bf16.mxu1 %v2611_v14  ;;  %v1436_v42 = vld [vmem:[#allocation2 + $0x258] sm:$0xff] }
 0x513   :  { %v2849_v50 = vpop.eup %2848  ;;  %v1370_v26 = vadd.f32 %v1369_v43, %v1233_v18  ;;  %2614 = vmatpush3.bf16.msra.mxu1 %v2611_v14  ;;  %v1438_v18 = vld [vmem:[#allocation2 + $0x268] sm:$0xff] }
 0x514   :  { %2858 = vtanh.f32 %v1375_v23  ;;  %v2615_v6 = vpack.c.bf16 %v2847_v46, %v2849_v50  ;;  %v1451_v11 = vpop.permute.xlu1 %1450 }
 0x515   :  { %2860 = vtanh.f32 %v1370_v26  ;;  %v2360_v10 = vpop.f32.mrb[42].mxu0 }
 0x516   :  { %v2851_v19 = vpop.eup %2850  ;;  %v1385_v16 = vadd.f32 %v2360_v10, %v1245_v35  ;;  %v1379_v17 = vpop.f32.mrb[43].mxu0  ;;  %2616 = vmatprep.subr.bf16.mxu1 %v2615_v6 }
 0x517   :  { %v2853_v20 = vpop.eup %2852  ;;  %v1380_v24 = vadd.f32 %v1379_v17, %v1241_v59  ;;  %2618 = vmatpush3.bf16.msra.mxu1 %v2615_v6  ;;  %v1447_v35 = vpop.permute.xlu0 %1446 }
 0x518   :  { %2862 = vtanh.f32 %v1385_v16  ;;  %v2619_v63 = vpack.c.bf16 %v2851_v19, %v2853_v20  ;;  %v1455_v14 = vpop.permute.xlu1 %1454 }
 0x519   :  { %2864 = vtanh.f32 %v1380_v24  ;;  %v2363_v22 = vpop.f32.mrb[44].mxu0 }
 0x51a   :  { %v2855_v56 = vpop.eup %2854  ;;  %v1395_v25 = vadd.f32 %v2363_v22, %v1253_v21  ;;  %v1389_v28 = vpop.f32.mrb[45].mxu0  ;;  %2620 = vmatprep.subr.bf16.mxu1 %v2619_v63 }
 0x51b   :  { %v2857_v29 = vpop.eup %2856  ;;  %v1390_v33 = vadd.f32 %v1389_v28, %v1249_v60  ;;  %2622 = vmatpush3.bf16.msra.mxu1 %v2619_v63  ;;  %v1459_v46 = vpop.permute.xlu0 %1458 }
 0x51c   :  { %2866 = vtanh.f32 %v1395_v25  ;;  %v2623_v36 = vpack.c.bf16 %v2855_v56, %v2857_v29  ;;  %v1463_v15 = vpop.permute.xlu1 %1462 }
 0x51d   :  { %2868 = vtanh.f32 %v1390_v33  ;;  %v2366_v38 = vpop.f32.mrb[46].mxu0 }
 0x51e   :  { %v2859_v4 = vpop.eup %2858  ;;  %v1405_v40 = vadd.f32 %v2366_v38, %v1261_v37  ;;  %v1399_v1 = vpop.f32.mrb[47].mxu0  ;;  %2624 = vmatprep.subr.bf16.mxu1 %v2623_v36 }
 0x51f   :  { %v2861_v31 = vpop.eup %2860  ;;  %v1400_v34 = vadd.f32 %v1399_v1, %v1257_v39  ;;  %2626 = vmatpush3.bf16.msra.mxu1 %v2623_v36  ;;  %v1467_v10 = vpop.permute.xlu0 %1466 }
 0x520   :  { %2870 = vtanh.f32 %v1405_v40  ;;  %v2627_v44 = vpack.c.bf16 %v2859_v4, %v2861_v31  ;;  %v1471_v26 = vpop.permute.xlu1 %1470 }
 0x521   :  { %2872 = vtanh.f32 %v1400_v34 }
 0x522   :  { %v2863_v45 = vpop.eup %2862  ;;  %2628 = vmatprep.subr.bf16.mxu1 %v2627_v44 }
 0x523   :  { %v2865_v47 = vpop.eup %2864  ;;  %2630 = vmatpush3.bf16.msra.mxu1 %v2627_v44  ;;  %v1475_v63 = vpop.permute.xlu0 %1474 }
 0x524   :  { %v2631_v48 = vpack.c.bf16 %v2863_v45, %v2865_v47  ;;  %v1479_v24 = vpop.permute.xlu1 %1478 }
 0x526   :  { %v2867_v51 = vpop.eup %2866  ;;  %2632 = vmatprep.subr.bf16.mxu1 %v2631_v48 }
 0x527   :  { %v2869_v52 = vpop.eup %2868  ;;  %2634 = vmatpush3.bf16.msra.mxu1 %v2631_v48  ;;  %v1483_v39 = vpop.permute.xlu0 %1482 }
 0x528   :  { %v2635_v53 = vpack.c.bf16 %v2867_v51, %v2869_v52  ;;  %v1487_v37 = vpop.permute.xlu1 %1486 }
 0x52a   :  { %v2871_v54 = vpop.eup %2870  ;;  %2636 = vmatprep.subr.bf16.mxu1 %v2635_v53 }
 0x52b   :  { %v2873_v57 = vpop.eup %2872  ;;  %2638 = vmatpush3.bf16.msra.mxu1 %v2635_v53 }
 0x52c   :  { %v2639_v61 = vpack.c.bf16 %v2871_v54, %v2873_v57  ;;  %v1495_v53 = vpop.permute.xlu1 %1494  ;;  %v1491_v57 = vpop.permute.xlu0 %1490 }
 0x52e   :  { %2640 = vmatprep.subr.bf16.mxu1 %v2639_v61 }
 0x52f   :  { %2642 = vmatpush3.bf16.msra.mxu1 %v2639_v61 }
 0x532   :  { %2400 = vmatmul.mubr.f32.vlgmr.msra.gmra.mrb[32].mxu1 %v1426_v58 }
 0x533   :  { %2402 = vmatprep.mubr.f32.mxu1 %v1427_v30 }
 0x536   :  { %2403 = vmatmul.mubr.f32.gmra.mrb[34].mxu1 %v1428_v62 }
 0x537   :  { %2405 = vmatprep.mubr.f32.mxu1 %v1429_v49 }
 0x53a   :  { %2406 = vmatmul.mubr.f32.gmra.mrb[36].mxu1 %v1430_v2 }
 0x53b   :  { %2408 = vmatprep.mubr.f32.mxu1 %v1431_v55 }
 0x53e   :  { %2409 = vmatmul.mubr.f32.gmra.mrb[38].mxu1 %v1432_v0 }
 0x53f   :  { %2411 = vmatprep.mubr.f32.mxu1 %v1433_v3  ;;  %v1503_v3 = vpop.permute.xlu1 %1502 }
 0x542   :  { %2412 = vmatmul.mubr.f32.gmra.mrb[40].mxu1 %v1434_v5 }
 0x543   :  { %2414 = vmatprep.mubr.f32.mxu1 %v1435_v9 }
 0x546   :  { %2415 = vmatmul.mubr.f32.gmra.mrb[42].mxu1 %v1436_v42  ;;  %v1499_v42 = vpop.permute.xlu0 %1498 }
 0x547   :  { %2417 = vmatprep.mubr.f32.mxu1 %v1437_v12 }
 0x54a   :  { %2418 = vmatmul.mubr.f32.gmra.mrb[44].mxu1 %v1438_v18 }
 0x54b   :  { %2420 = vmatprep.mubr.f32.mxu1 %v1439_v32 }
 0x54e   :  { %2421 = vmatmul.mubr.f32.gmra.mrb[46].mxu1 %v1440_v41 }
 0x605   :  { %v2401_v59 = vpop.f32.mrb[32].mxu1 }
 0x606   :  { %v1577_v23 = vadd.f32 %v2401_v59, %v1447_v35  ;;  %v1571_v43 = vpop.f32.mrb[33].mxu1 }
 0x607   :  { %v1572_v50 = vadd.f32 %v1571_v43, %v1443_v8  ;;  %v1668_v43 = vld [vmem:[#allocation2 + $0x288] sm:$0xff] }
 0x608   :  { %2874 = vtanh.f32 %v1577_v23 }
 0x609   :  { %2876 = vtanh.f32 %v1572_v50  ;;  %v2404_v6 = vpop.f32.mrb[34].mxu1  ;;  %v1669_v50 = vld [vmem:[#allocation2 + $0x290] sm:$0xff] }
 0x60a   :  { %v1587_v19 = vadd.f32 %v2404_v6, %v1455_v14  ;;  %v1581_v16 = vpop.f32.mrb[35].mxu1  ;;  %v1671_v6 = vld [vmem:[#allocation2 + $0x2a0] sm:$0xff] }
 0x60b   :  { %v1582_v17 = vadd.f32 %v1581_v16, %v1451_v11  ;;  %v1674_v16 = vld [vmem:[#allocation2 + $0x2b8] sm:$0xff] }
 0x60c   :  { %2878 = vtanh.f32 %v1587_v19  ;;  %v1673_v19 = vld [vmem:[#allocation2 + $0x2b0] sm:$0xff] }
 0x60d   :  { %2880 = vtanh.f32 %v1582_v17  ;;  %v2407_v27 = vpop.f32.mrb[36].mxu1  ;;  %v1675_v17 = vld [vmem:[#allocation2 + $0x2c0] sm:$0xff] }
 0x60e   :  { %v1597_v20 = vadd.f32 %v2407_v27, %v1463_v15  ;;  %v1591_v21 = vpop.f32.mrb[37].mxu1  ;;  %v1676_v27 = vld [vmem:[#allocation2 + $0x2c8] sm:$0xff] }
 0x60f   :  { %v1592_v60 = vadd.f32 %v1591_v21, %v1459_v46  ;;  %v1678_v21 = vld [vmem:[#allocation2 + $0x2d8] sm:$0xff] }
 0x610   :  { %2882 = vtanh.f32 %v1597_v20  ;;  %v1677_v20 = vld [vmem:[#allocation2 + $0x2d0] sm:$0xff] }
 0x611   :  { %2884 = vtanh.f32 %v1592_v60  ;;  %v2410_v22 = vpop.f32.mrb[38].mxu1  ;;  %v1680_v60 = vld [vmem:[#allocation2 + $0x2e8] sm:$0xff] }
 0x612   :  { %v2875_v56 = vpop.eup %2874  ;;  %v1607_v25 = vadd.f32 %v2410_v22, %v1471_v26  ;;  %v1601_v28 = vpop.f32.mrb[39].mxu1  ;;  %v1670_v26 = vld [vmem:[#allocation2 + $0x298] sm:$0xff] }
 0x613   :  { %v2877_v29 = vpop.eup %2876  ;;  %v1602_v33 = vadd.f32 %v1601_v28, %v1467_v10  ;;  %v1672_v10 = vld [vmem:[#allocation2 + $0x2a8] sm:$0xff]  ;;  %v1682_v22 = vld [vmem:[#allocation2 + $0x2f8] sm:$0xff] }
 0x614   :  { %2886 = vtanh.f32 %v1607_v25  ;;  %v2643_v36 = vpack.c.bf16 %v2875_v56, %v2877_v29  ;;  %v1685_v56 = vpop.permute.xlu0 %1684 }
 0x615   :  { %2888 = vtanh.f32 %v1602_v33  ;;  %v2413_v38 = vpop.f32.mrb[40].mxu1 }
 0x616   :  { %v2879_v4 = vpop.eup %2878  ;;  %v1617_v40 = vadd.f32 %v2413_v38, %v1479_v24  ;;  %v1611_v1 = vpop.f32.mrb[41].mxu1  ;;  %2644 = vmatprep.subr.bf16.mxu0 %v2643_v36  ;;  %v1679_v24 = vld [vmem:[#allocation2 + $0x2e0] sm:$0xff] }
 0x617   :  { %v2881_v31 = vpop.eup %2880  ;;  %v1612_v34 = vadd.f32 %v1611_v1, %v1475_v63  ;;  %2646 = vmatpush3.bf16.msra.mxu0 %v2643_v36  ;;  %v1681_v63 = vld [vmem:[#allocation2 + $0x2f0] sm:$0xff] }
 0x618   :  { %2890 = vtanh.f32 %v1617_v40  ;;  %v2647_v44 = vpack.c.bf16 %v2879_v4, %v2881_v31 }
 0x619   :  { %2892 = vtanh.f32 %v1612_v34  ;;  %v2416_v45 = vpop.f32.mrb[42].mxu1 }
 0x61a   :  { %v2883_v47 = vpop.eup %2882  ;;  %v1627_v48 = vadd.f32 %v2416_v45, %v1487_v37  ;;  %v1621_v51 = vpop.f32.mrb[43].mxu1  ;;  %2648 = vmatprep.subr.bf16.mxu0 %v2647_v44 }
 0x61b   :  { %v2885_v52 = vpop.eup %2884  ;;  %v1622_v54 = vadd.f32 %v1621_v51, %v1483_v39  ;;  %2650 = vmatpush3.bf16.msra.mxu0 %v2647_v44 }
 0x61c   :  { %2894 = vtanh.f32 %v1627_v48  ;;  %v2651_v61 = vpack.c.bf16 %v2883_v47, %v2885_v52 }
 0x61d   :  { %2896 = vtanh.f32 %v1622_v54  ;;  %v2419_v58 = vpop.f32.mrb[44].mxu1 }
 0x61e   :  { %v2887_v30 = vpop.eup %2886  ;;  %v1637_v62 = vadd.f32 %v2419_v58, %v1495_v53  ;;  %v1631_v49 = vpop.f32.mrb[45].mxu1  ;;  %2652 = vmatprep.subr.bf16.mxu0 %v2651_v61 }
 0x61f   :  { %v2889_v2 = vpop.eup %2888  ;;  %v1632_v55 = vadd.f32 %v1631_v49, %v1491_v57  ;;  %2654 = vmatpush3.bf16.msra.mxu0 %v2651_v61 }
 0x620   :  { %2898 = vtanh.f32 %v1637_v62  ;;  %v2655_v0 = vpack.c.bf16 %v2887_v30, %v2889_v2 }
 0x621   :  { %2900 = vtanh.f32 %v1632_v55  ;;  %v2422_v5 = vpop.f32.mrb[46].mxu1 }
 0x622   :  { %v2891_v9 = vpop.eup %2890  ;;  %v1647_v12 = vadd.f32 %v2422_v5, %v1503_v3  ;;  %v1641_v18 = vpop.f32.mrb[47].mxu1  ;;  %2656 = vmatprep.subr.bf16.mxu0 %v2655_v0 }
 0x623   :  { %v2893_v32 = vpop.eup %2892  ;;  %v1642_v41 = vadd.f32 %v1641_v18, %v1499_v42  ;;  %2658 = vmatpush3.bf16.msra.mxu0 %v2655_v0 }
 0x624   :  { %2902 = vtanh.f32 %v1647_v12  ;;  %v2659_v7 = vpack.c.bf16 %v2891_v9, %v2893_v32 }
 0x625   :  { %2904 = vtanh.f32 %v1642_v41 }
 0x626   :  { %v2895_v13 = vpop.eup %2894  ;;  %2660 = vmatprep.subr.bf16.mxu0 %v2659_v7 }
 0x627   :  { %v2897_v8 = vpop.eup %2896  ;;  %2662 = vmatpush3.bf16.msra.mxu0 %v2659_v7 }
 0x628   :  { %v2663_v11 = vpack.c.bf16 %v2895_v13, %v2897_v8 }
 0x62a   :  { %v2899_v14 = vpop.eup %2898  ;;  %2664 = vmatprep.subr.bf16.mxu0 %v2663_v11 }
 0x62b   :  { %v2901_v35 = vpop.eup %2900  ;;  %2666 = vmatpush3.bf16.msra.mxu0 %v2663_v11 }
 0x62c   :  { %v2667_v15 = vpack.c.bf16 %v2899_v14, %v2901_v35 }
 0x62e   :  { %v2903_v46 = vpop.eup %2902  ;;  %2668 = vmatprep.subr.bf16.mxu0 %v2667_v15 }
 0x62f   :  { %v2905_v59 = vpop.eup %2904  ;;  %2670 = vmatpush3.bf16.msra.mxu0 %v2667_v15 }
 0x630   :  { %v2671_v23 = vpack.c.bf16 %v2903_v46, %v2905_v59 }
 0x632   :  { %2672 = vmatprep.subr.bf16.mxu0 %v2671_v23 }
 0x633   :  { %2674 = vmatpush3.bf16.msra.mxu0 %v2671_v23 }
 0x636   :  { %2456 = vmatmul.mubr.f32.vlgmr.msra.gmra.mrb[48].mxu0 %v1668_v43 }
 0x637   :  { %2458 = vmatprep.mubr.f32.mxu0 %v1669_v50 }
 0x63a   :  { %2459 = vmatmul.mubr.f32.gmra.mrb[50].mxu0 %v1670_v26 }
 0x63b   :  { %2461 = vmatprep.mubr.f32.mxu0 %v1671_v6 }
 0x63e   :  { %2462 = vmatmul.mubr.f32.gmra.mrb[52].mxu0 %v1672_v10 }
 0x63f   :  { %2464 = vmatprep.mubr.f32.mxu0 %v1673_v19 }
 0x642   :  { %2465 = vmatmul.mubr.f32.gmra.mrb[54].mxu0 %v1674_v16 }
 0x643   :  { %2467 = vmatprep.mubr.f32.mxu0 %v1675_v17 }
 0x646   :  { %2468 = vmatmul.mubr.f32.gmra.mrb[56].mxu0 %v1676_v27 }
 0x647   :  { %2470 = vmatprep.mubr.f32.mxu0 %v1677_v20 }
 0x64a   :  { %2471 = vmatmul.mubr.f32.gmra.mrb[58].mxu0 %v1678_v21 }
 0x64b   :  { %2473 = vmatprep.mubr.f32.mxu0 %v1679_v24 }
 0x64e   :  { %2474 = vmatmul.mubr.f32.gmra.mrb[60].mxu0 %v1680_v60 }
 0x64f   :  { %2476 = vmatprep.mubr.f32.mxu0 %v1681_v63 }
 0x652   :  { %2477 = vmatmul.mubr.f32.gmra.mrb[62].mxu0 %v1682_v22 }
 0x709   :  { %v2457_v25 = vpop.f32.mrb[48].mxu0 }
 0x70a   :  { %v1798_v28 = vpop.f32.mrb[49].mxu0 }
 0x70b   :  { %v1799_v29 = vadd.f32 %v1798_v28, %v1685_v56 }
 0x70d   :  { %v1901_v33 = vmul.f32 -1.442695, %v1799_v29  ;;  %v2460_v36 = vpop.f32.mrb[50].mxu0 }
 0x70e   :  { %v1807_v37 = vpop.f32.mrb[51].mxu0 }
 0x70f   :  { %2906 = vpow2.f32 %v1901_v33 }
 0x711   :  { %v2463_v38 = vpop.f32.mrb[52].mxu0 }
 0x712   :  { %v1815_v4 = vpop.f32.mrb[53].mxu0 }
 0x715   :  { %v2466_v39 = vpop.f32.mrb[54].mxu0 }
 0x716   :  { %v1823_v40 = vpop.f32.mrb[55].mxu0 }
 0x719   :  { %v2907_v1 = vpop.eup %2906  ;;  %v2469_v31 = vpop.f32.mrb[56].mxu0 }
 0x71a   :  { %v1865_v34 = vadd.f32 1.0, %v2907_v1  ;;  %v1831_v44 = vpop.f32.mrb[57].mxu0 }
 0x71c   :  { %2908 = vrcp.f32 %v1865_v34 }
 0x71d   :  { %v2472_v45 = vpop.f32.mrb[58].mxu0 }
 0x71e   :  { %v1839_v47 = vpop.f32.mrb[59].mxu0 }
 0x721   :  { %v2475_v48 = vpop.f32.mrb[60].mxu0 }
 0x722   :  { %v1847_v51 = vpop.f32.mrb[61].mxu0 }
 0x725   :  { %v2478_v52 = vpop.f32.mrb[62].mxu0 }
 0x726   :  { %v2909_v53 = vpop.eup %2908  ;;  %v1855_v54 = vpop.f32.mrb[63].mxu0 }
 0x727   :  { %v1868_v57 = vsub.f32 1.0, %v2909_v53 }
 0x729   :  { %1869 = vst [vmem:[#allocation5] sm:$0x1] %v1868_v57 }
 0x72a   :  { %2960 = shalt.err (!%p2957_p12)
}
 0x72b   :  { %s2961_s27 = scalar_lea.hbm %s3471_s4, 16 }
 0x72c   :  { %p2962_p13 = scmp.ne.s32.totalorder %s3471_s4, %s2961_s27  ;;  %p2965_p0 = scmp.lt.u32.totalorder %s2961_s27, %s3471_s4 }
 0x72e   :  { %p2967_p1 = pnand %p2965_p0, %p2962_p13 }
 0x730   :  { %2970 = shalt.err (!%p2967_p1)
}
 0x731   :  { %1879 = dma.vmem_to_hbm [thread:$0]  %s1877_s3, 16, %s3471_s4, [#allocation4]  }
 0x732   :  { %2973 = dma.done.wait [#allocation4], 16  }
 0x733   :  { %2974 = vsyncadd [#allocation4], 4294967280 }
 0x734   :  { %1883 = vsyncpa [#allocation3], 1 }
 0x735   :  { %1884 = vsyncpa [#allocation4], 1 }

</bundles_post_ra>
